<compile_context>
chip_gen: v7x
topology: tpu7x:2x2x1
jax: 0.10.0
libtpu: 0.0.40
codegen_flags: <defaults>
</compile_context>

<pallas_src>
import functools

import jax
import jax.numpy as jnp
from jax.experimental import pallas as pl
from jax.experimental.pallas import tpu as pltpu

_SQRT1_2 = 0.7071067811865476


def _erf(z):
    # Abramowitz & Stegun 7.1.26 (max abs error ~1.5e-7); uses only abs/exp/
    # where/mul/add/div so we do not depend on an erf primitive lowering.
    az = jnp.abs(z)
    t = 1.0 / (1.0 + 0.3275911 * az)
    poly = ((((1.061405429 * t - 1.453152027) * t + 1.421413741) * t
             - 0.284496736) * t + 0.254829592) * t
    e = 1.0 - poly * jnp.exp(-az * az)
    return jnp.where(z >= 0, e, -e)


def _gelu_exact(h):
    # Exact (erf-based) GELU, matching torch.nn.GELU() default.
    return 0.5 * h * (1.0 + _erf(h * _SQRT1_2))


def _block_kernel(x_ref, g1_ref, b1_ref, wq_ref, wk_ref, wv_ref, wproj_ref,
                  bproj_ref, resg_ref, g2_ref, b2_ref, w1_ref, fb1_ref,
                  w2_ref, fb2_ref, o_ref, *scratch, num_heads, head_dim, eps,
                  q_block, n_valid, use_kv_scratch):
    N, C = x_ref.shape                  # N = padded sequence length
    op = wq_ref.dtype                   # MXU operand dtype (bf16 perf / f32 accuracy)
    approx = op == jnp.bfloat16         # approx reciprocal only in the bf16 config

    def layernorm(h, g_ref, b_ref):
        mu = jnp.mean(h, axis=-1, keepdims=True)
        var = jnp.mean((h - mu) ** 2, axis=-1, keepdims=True)
        return (h - mu) * jax.lax.rsqrt(var + eps) * g_ref[...] + b_ref[...]

    def kv_heads(h_kv):
        hc = h_kv.astype(op)
        k = jnp.dot(hc, wk_ref[...], preferred_element_type=jnp.float32)
        v = jnp.dot(hc, wv_ref[...], preferred_element_type=jnp.float32)
        return (k.reshape(N, num_heads, head_dim).astype(op),
                v.reshape(N, num_heads, head_dim).astype(op))

    if use_kv_scratch:
        # K/V (and the LN feeding them) are computed once per batch element at
        # qt == 0 and reused by the remaining query tiles (qt axis is
        # "arbitrary", so the scratch carry is sequential per core).
        k_scr, v_scr = scratch

        @pl.when(pl.program_id(1) == 0)
        def _():
            kh0, vh0 = kv_heads(layernorm(x_ref[...], g1_ref, b1_ref))
            k_scr[...] = kh0
            v_scr[...] = vh0

        kh = k_scr[...]
        vh = v_scr[...]
        row0 = pl.multiple_of(pl.program_id(1) * q_block, q_block)
        x_rows = x_ref[pl.ds(row0, q_block), :]
        h_q = layernorm(x_rows, g1_ref, b1_ref)
    elif q_block == N:
        x_rows = x_ref[...]
        h_q = layernorm(x_rows, g1_ref, b1_ref)
        kh, vh = kv_heads(h_q)
    else:
        # q split without shared K/V (e.g. B == 1 on v7x so both TensorCores
        # get a tile; re-pays the K/V matmuls).
        kh, vh = kv_heads(layernorm(x_ref[...], g1_ref, b1_ref))
        row0 = pl.multiple_of(pl.program_id(1) * q_block, q_block)
        x_rows = x_ref[pl.ds(row0, q_block), :]
        h_q = layernorm(x_rows, g1_ref, b1_ref)

    # ---------------- attention ----------------
    # 1/sqrt(head_dim) is folded into wq, attn_gate into wproj (wrapper).
    q = jnp.dot(h_q.astype(op), wq_ref[...], preferred_element_type=jnp.float32)
    qh = q.reshape(q_block, num_heads, head_dim).astype(op)

    s = jnp.einsum('qhd,khd->hqk', qh, kh, preferred_element_type=jnp.float32)
    if n_valid < N:                                          # mask padded keys
        key_ids = jax.lax.broadcasted_iota(jnp.int32, (1, 1, N), 2)
        s = jnp.where(key_ids >= n_valid, -1e30, s)
    s = s - jnp.max(s, axis=-1, keepdims=True)
    p = jnp.exp(s)                                           # un-normalized probs
    row_sum = jnp.sum(p, axis=-1)                            # (H, q)
    attn_h = jnp.einsum('hqk,khd->hqd', p.astype(op), vh,
                        preferred_element_type=jnp.float32)
    # Deferred softmax normalization on the small (H, q, d) output (EUP recip).
    inv = pl.reciprocal(row_sum, approx=approx)
    attn_h = attn_h * inv[:, :, None]
    # TODO(synk): at N >= ~256 (v7x) / ~512 (v5e/v6e) replace the materialized
    # (H, q, N) score tensor with a K/V-tiled flash-style online softmax.

    # Head-batched projection against wproj reshaped to (H, d, C): lands
    # directly in a lane-dense (q, C) slab (no (q,H,d)->(q,C) merge relayout).
    proj_h = jnp.einsum('hqd,hdc->hqc', attn_h.astype(op), wproj_ref[...],
                        preferred_element_type=jnp.float32)
    proj = jnp.sum(proj_h, axis=0) + bproj_ref[...]
    y = (x_rows + proj) * resg_ref[...]                      # residual + res_gate

    # ---------------- MLP ----------------
    h2 = layernorm(y, g2_ref, b2_ref)
    hid = jnp.dot(h2.astype(op), w1_ref[...],
                  preferred_element_type=jnp.float32) + fb1_ref[...]
    hid = _gelu_exact(hid)                      # hidden_gate1 folded into w1/fb1
    mlp = jnp.dot(hid.astype(op), w2_ref[...],
                  preferred_element_type=jnp.float32) + fb2_ref[...]

    o_ref[...] = ((y + mlp) * resg_ref[...]).astype(o_ref.dtype)


def block_forward(x, params, num_heads, *, q_block=None,
                  weight_dtype=jnp.bfloat16, seq_align=8,
                  share_kv_across_q_tiles=True, weight_buffer_count=None):
    """One ViT Block forward.

    weight_dtype: MXU operand dtype. bf16 (default) feeds the bf16 MXU on
      v5e/v6e/v7x with f32 accumulation; pass jnp.float32 for strict accuracy.
    q_block: query-tile rows (multiple of 8, or the padded N). With more than
      one tile, K/V are computed once per batch element into VMEM scratch.
    weight_buffer_count: None -> default pipelining; 1 -> single-buffered
      resident weights (pipeline_mode=pl.Buffered(1); halves weight VMEM at
      real ViT widths on v7x) -- fails loudly if unsupported, no silent fallback.
    """
    B, N, C = x.shape
    assert C % num_heads == 0
    head_dim = C // num_heads
    hidden = params["w1"].shape[1]
    scale = head_dim ** (-0.5)
    wdt = jnp.dtype(weight_dtype)

    # Pad the sequence so the sublane (rows) / lane (score columns) axes are
    # tile-friendly (ViT's N=197); padded keys are masked inside the kernel.
    n_pad = -(-N // seq_align) * seq_align
    if n_pad != N:
        x = jnp.pad(x, ((0, 0), (0, n_pad - N), (0, 0)))

    if q_block is None:
        q_block = n_pad
    assert n_pad % q_block == 0 and (q_block == n_pad or q_block % 8 == 0)
    n_q = n_pad // q_block
    use_kv_scratch = share_kv_across_q_tiles and n_q > 1

    # ---- fold static transforms into the weights (free; same math) ----
    agate_rows = jnp.repeat(params["attn_gate"], head_dim)            # (C,)
    wq = (params["wqkv"][:, :C] * scale).astype(wdt)                  # scale folded in
    wk = params["wqkv"][:, C:2 * C].astype(wdt)
    wv = params["wqkv"][:, 2 * C:].astype(wdt)
    wproj3 = ((agate_rows[:, None] * params["wproj"])                 # attn_gate folded in
              .reshape(num_heads, head_dim, C).astype(wdt))
    w1 = (params["w1"] * params["hgate"][None, :]).astype(wdt)        # hidden_gate1 folded in
    fb1 = (params["fb1"] * params["hgate"])[None, :].astype(jnp.float32)
    w2 = params["w2"].astype(wdt)

    kernel = functools.partial(
        _block_kernel, num_heads=num_heads, head_dim=head_dim, eps=1e-5,
        q_block=q_block, n_valid=N, use_kv_scratch=use_kv_scratch)

    args = (
        x,
        params["g1"][None, :], params["b1"][None, :],
        wq, wk, wv,
        wproj3, params["bproj"][None, :],
        params["res_w"][None, :],
        params["g2"][None, :], params["b2"][None, :],
        w1, fb1, w2, params["fb2"][None, :],
    )

    pipe = (None if weight_buffer_count is None
            else pl.Buffered(int(weight_buffer_count)))

    def wspec(shape):
        zeros = (0,) * len(shape)
        if pipe is None:
            return pl.BlockSpec(shape, lambda b, qt: zeros)
        return pl.BlockSpec(shape, lambda b, qt: zeros, pipeline_mode=pipe)

    in_specs = [
        pl.BlockSpec((pl.Squeezed(), n_pad, C), lambda b, qt: (b, 0, 0)),  # x
        wspec((1, C)), wspec((1, C)),                                      # g1, b1
        wspec((C, C)), wspec((C, C)), wspec((C, C)),                       # wq, wk, wv
        wspec((num_heads, head_dim, C)), wspec((1, C)),                    # wproj, bproj
        wspec((1, C)),                                                     # res_gate
        wspec((1, C)), wspec((1, C)),                                      # g2, b2
        wspec((C, hidden)), wspec((1, hidden)),                            # w1, fb1
        wspec((hidden, C)), wspec((1, C)),                                 # w2, fb2
    ]
    out_spec = pl.BlockSpec((pl.Squeezed(), q_block, C), lambda b, qt: (b, qt, 0))

    scratch_shapes = []
    if use_kv_scratch:
        scratch_shapes = [pltpu.VMEM((n_pad, num_heads, head_dim), wdt),
                          pltpu.VMEM((n_pad, num_heads, head_dim), wdt)]

    # ---- generation-aware VMEM budget ----
    w_isz = wdt.itemsize
    wbuf = 2 if weight_buffer_count is None else max(1, int(weight_buffer_count))
    wbytes = (4 * C * C + 2 * C * hidden) * w_isz * wbuf
    io = (n_pad * C + q_block * C) * 4 * 2              # double-buffered x / out blocks
    kv_scr = 2 * n_pad * C * w_isz if use_kv_scratch else 0
    inter = (5 * n_pad * C * 4
             + 2 * num_heads * q_block * n_pad * 4      # scores + probs
             + num_heads * q_block * C * 4              # per-head projection
             + 3 * q_block * hidden * 4
             + 8 * q_block * C * 4)
    budget = wbytes + io + kv_scr + 2 * inter + (8 << 20)
    try:
        phys_vmem = int(pltpu.get_tpu_info().vmem_capacity_bytes)
    except Exception:
        phys_vmem = 64 << 20                            # conservative (v7x per-TC)
    cap = int(phys_vmem * 0.85)                         # leave compiler headroom
    vmem_limit = int(min(max(budget, 32 << 20), cap))

    out = pl.pallas_call(
        kernel,
        out_shape=jax.ShapeDtypeStruct((B, n_pad, C), jnp.float32),
        grid=(B, n_q),
        in_specs=in_specs,
        out_specs=out_spec,
        scratch_shapes=scratch_shapes,
        compiler_params=pltpu.CompilerParams(
            dimension_semantics=(("parallel", "arbitrary") if use_kv_scratch
                                 else ("parallel", "parallel")),
            vmem_limit_bytes=vmem_limit),
    )(*args)

    if n_pad != N:
        out = out[:, :N, :]
    return out


def ref_forward(x, p, num_heads):
    """Pure-JAX reference mirroring the PyTorch forward exactly."""
    B, N, C = x.shape
    hd = C // num_heads
    scale = hd ** (-0.5)

    def ln(h, g, b):
        mu = h.mean(-1, keepdims=True)
        var = ((h - mu) ** 2).mean(-1, keepdims=True)
        return (h - mu) / jnp.sqrt(var + 1e-5) * g + b

    h = ln(x, p["g1"], p["b1"])
    qkv = h @ p["wqkv"]
    qkv = qkv.reshape(B, N, 3, num_heads, hd).transpose(2, 0, 3, 1, 4)
    q, k, v = qkv[0], qkv[1], qkv[2]
    attn = (q @ jnp.swapaxes(k, -2, -1)) * scale
    attn = jax.nn.softmax(attn, axis=-1)
    o = attn @ v                                     # (B, H, N, hd)
    o = o * p["attn_gate"][None, :, None, None]      # attn_gate weight [1,-1,1,1]
    o = o.transpose(0, 2, 1, 3).reshape(B, N, C)
    o = o @ p["wproj"] + p["bproj"]
    x = (x + o) * p["res_w"]
    h2 = ln(x, p["g2"], p["b2"])
    hid = h2 @ p["w1"] + p["fb1"]
    hid = hid * p["hgate"]                           # hidden_gate1 weight [1,1,-1]
    hid = jax.nn.gelu(hid, approximate=False)
    m = hid @ p["w2"] + p["fb2"]
    x = (x + m) * p["res_w"]
    return x


if __name__ == "__main__":
    num_heads = 4
    mlp_ratio = 4.0

    def make_inputs(key, B, N, C):
        hidden = int(C * mlp_ratio)
        ks = jax.random.split(key, 13)
        s = 0.02
        params = {
            "g1": jnp.ones((C,), jnp.float32),
            "b1": jnp.zeros((C,), jnp.float32),
            "wqkv": s * jax.random.normal(ks[0], (C, 3 * C), jnp.float32),
            "attn_gate": 1.0 + 0.1 * jax.random.normal(ks[1], (num_heads,), jnp.float32),
            "wproj": s * jax.random.normal(ks[2], (C, C), jnp.float32),
            "bproj": s * jax.random.normal(ks[3], (C,), jnp.float32),
            "res_w": 1.0 + 0.1 * jax.random.normal(ks[4], (C,), jnp.float32),
            "g2": 1.0 + 0.1 * jax.random.normal(ks[5], (C,), jnp.float32),
            "b2": s * jax.random.normal(ks[6], (C,), jnp.float32),
            "w1": s * jax.random.normal(ks[7], (C, hidden), jnp.float32),
            "fb1": s * jax.random.normal(ks[8], (hidden,), jnp.float32),
            "hgate": 1.0 + 0.1 * jax.random.normal(ks[9], (hidden,), jnp.float32),
            "w2": s * jax.random.normal(ks[10], (hidden, C), jnp.float32),
            "fb2": s * jax.random.normal(ks[11], (C,), jnp.float32),
        }
        x = jax.random.normal(ks[12], (B, N, C), jnp.float32)
        return x, params

    root = jax.random.PRNGKey(0)
    key_a, key_b = jax.random.split(root)

    # aligned sequence: B=2, N=16, C=32, heads=4, hidden=128
    x, params = make_inputs(key_a, 2, 16, 32)
    ref = ref_forward(x, params, num_heads)

    # 1) strict-accuracy config: f32 MXU operands, one query tile
    out = jax.block_until_ready(
        block_forward(x, params, num_heads, weight_dtype=jnp.float32))
    assert out.shape == ref.shape
    err = float(jnp.max(jnp.abs(out - ref)))
    assert jnp.allclose(out, ref, atol=1e-4, rtol=1e-4), ("f32/full", err)

    # 2) f32 with two query tiles -> exercises the shared-K/V scratch path
    out = jax.block_until_ready(
        block_forward(x, params, num_heads, weight_dtype=jnp.float32, q_block=8))
    err = float(jnp.max(jnp.abs(out - ref)))
    assert jnp.allclose(out, ref, atol=1e-4, rtol=1e-4), ("f32/split", err)

    # 3) perf default: bf16 MXU operands with f32 accumulation (looser tol)
    out = jax.block_until_ready(block_forward(x, params, num_heads))
    err = float(jnp.max(jnp.abs(out - ref)))
    assert jnp.allclose(out, ref, atol=2e-2, rtol=2e-2), ("bf16/full", err)

    # 4) ragged sequence (N=13 -> padded to 16, padded keys masked), strict f32
    x2, params2 = make_inputs(key_b, 2, 13, 32)
    ref2 = ref_forward(x2, params2, num_heads)
    out2 = jax.block_until_ready(
        block_forward(x2, params2, num_heads, weight_dtype=jnp.float32))
    err = float(jnp.max(jnp.abs(out2 - ref2)))
    assert jnp.allclose(out2, ref2, atol=1e-4, rtol=1e-4), ("f32/ragged", err)

    print("KERNEL_OK")
</pallas_src>

<mosaic_0001>
module attributes {stable_mosaic.version = 11 : i64} {
  func.func @_block_kernel(%arg0: i32, %arg1: i32, %arg2: memref<1x16x32xf32, #tpu.memory_space<vmem>>, %arg3: memref<1x32xf32, #tpu.memory_space<vmem>>, %arg4: memref<1x32xf32, #tpu.memory_space<vmem>>, %arg5: memref<32x32xf32, #tpu.memory_space<vmem>>, %arg6: memref<32x32xf32, #tpu.memory_space<vmem>>, %arg7: memref<32x32xf32, #tpu.memory_space<vmem>>, %arg8: memref<4x8x32xf32, #tpu.memory_space<vmem>>, %arg9: memref<1x32xf32, #tpu.memory_space<vmem>>, %arg10: memref<1x32xf32, #tpu.memory_space<vmem>>, %arg11: memref<1x32xf32, #tpu.memory_space<vmem>>, %arg12: memref<1x32xf32, #tpu.memory_space<vmem>>, %arg13: memref<32x128xf32, #tpu.memory_space<vmem>>, %arg14: memref<1x128xf32, #tpu.memory_space<vmem>>, %arg15: memref<128x32xf32, #tpu.memory_space<vmem>>, %arg16: memref<1x32xf32, #tpu.memory_space<vmem>>, %arg17: memref<1x16x32xf32, #tpu.memory_space<vmem>>) attributes {dimension_semantics = [#tpu.dimension_semantics<parallel>, #tpu.dimension_semantics<parallel>], iteration_bounds = array<i64: 2, 1>, scalar_prefetch = 0 : i64, scratch_operands = 0 : i64, tpu.core_type = #tpu.core_type<tc>, window_params = [{transform_indices = @transform_0, window_bounds = array<i64: 1, 16, 32>}, {pipeline_mode = #tpu.pipeline_mode<synchronous>, transform_indices = @transform_1, window_bounds = array<i64: 1, 32>}, {pipeline_mode = #tpu.pipeline_mode<synchronous>, transform_indices = @transform_2, window_bounds = array<i64: 1, 32>}, {pipeline_mode = #tpu.pipeline_mode<synchronous>, transform_indices = @transform_3, window_bounds = array<i64: 32, 32>}, {pipeline_mode = #tpu.pipeline_mode<synchronous>, transform_indices = @transform_4, window_bounds = array<i64: 32, 32>}, {pipeline_mode = #tpu.pipeline_mode<synchronous>, transform_indices = @transform_5, window_bounds = array<i64: 32, 32>}, {pipeline_mode = #tpu.pipeline_mode<synchronous>, transform_indices = @transform_6, window_bounds = array<i64: 4, 8, 32>}, {pipeline_mode = #tpu.pipeline_mode<synchronous>, transform_indices = @transform_7, window_bounds = array<i64: 1, 32>}, {pipeline_mode = #tpu.pipeline_mode<synchronous>, transform_indices = @transform_8, window_bounds = array<i64: 1, 32>}, {pipeline_mode = #tpu.pipeline_mode<synchronous>, transform_indices = @transform_9, window_bounds = array<i64: 1, 32>}, {pipeline_mode = #tpu.pipeline_mode<synchronous>, transform_indices = @transform_10, window_bounds = array<i64: 1, 32>}, {pipeline_mode = #tpu.pipeline_mode<synchronous>, transform_indices = @transform_11, window_bounds = array<i64: 32, 128>}, {pipeline_mode = #tpu.pipeline_mode<synchronous>, transform_indices = @transform_12, window_bounds = array<i64: 1, 128>}, {pipeline_mode = #tpu.pipeline_mode<synchronous>, transform_indices = @transform_13, window_bounds = array<i64: 128, 32>}, {pipeline_mode = #tpu.pipeline_mode<synchronous>, transform_indices = @transform_14, window_bounds = array<i64: 1, 32>}, {transform_indices = @transform_15, window_bounds = array<i64: 1, 16, 32>}]} {
    %c0 = arith.constant 0 : index
    %c0_0 = arith.constant 0 : index
    %c0_1 = arith.constant 0 : index
    %0 = vector.load %arg2[%c0, %c0_0, %c0_1] : memref<1x16x32xf32, #tpu.memory_space<vmem>>, vector<1x16x32xf32>
    %1 = vector.shape_cast %0 : vector<1x16x32xf32> to vector<16x32xf32>
    %cst = arith.constant dense<0.000000e+00> : vector<16xf32>
    %2 = vector.multi_reduction <add>, %1, %cst [1] : vector<16x32xf32> to vector<16xf32>
    %3 = vector.shape_cast %2 : vector<16xf32> to vector<16x1xf32>
    %cst_2 = arith.constant 3.200000e+01 : f32
    %4 = vector.broadcast %cst_2 : f32 to vector<16x1xf32>
    %5 = arith.divf %3, %4 : vector<16x1xf32>
    %6 = vector.broadcast %5 : vector<16x1xf32> to vector<16x32xf32>
    %7 = arith.subf %1, %6 : vector<16x32xf32>
    %8 = arith.mulf %7, %7 : vector<16x32xf32>
    %cst_3 = arith.constant dense<0.000000e+00> : vector<16xf32>
    %9 = vector.multi_reduction <add>, %8, %cst_3 [1] : vector<16x32xf32> to vector<16xf32>
    %10 = vector.shape_cast %9 : vector<16xf32> to vector<16x1xf32>
    %cst_4 = arith.constant 3.200000e+01 : f32
    %11 = vector.broadcast %cst_4 : f32 to vector<16x1xf32>
    %12 = arith.divf %10, %11 : vector<16x1xf32>
    %13 = vector.broadcast %5 : vector<16x1xf32> to vector<16x32xf32>
    %14 = arith.subf %1, %13 : vector<16x32xf32>
    %cst_5 = arith.constant 9.99999974E-6 : f32
    %15 = vector.broadcast %cst_5 : f32 to vector<16x1xf32>
    %16 = arith.addf %12, %15 : vector<16x1xf32>
    %17 = math.rsqrt %16 : vector<16x1xf32>
    %18 = vector.broadcast %17 : vector<16x1xf32> to vector<16x32xf32>
    %19 = arith.mulf %14, %18 : vector<16x32xf32>
    %c0_6 = arith.constant 0 : index
    %c0_7 = arith.constant 0 : index
    %20 = vector.load %arg3[%c0_6, %c0_7] : memref<1x32xf32, #tpu.memory_space<vmem>>, vector<1x32xf32>
    %21 = vector.broadcast %20 : vector<1x32xf32> to vector<16x32xf32>
    %22 = arith.mulf %19, %21 : vector<16x32xf32>
    %c0_8 = arith.constant 0 : index
    %c0_9 = arith.constant 0 : index
    %23 = vector.load %arg4[%c0_8, %c0_9] : memref<1x32xf32, #tpu.memory_space<vmem>>, vector<1x32xf32>
    %24 = vector.broadcast %23 : vector<1x32xf32> to vector<16x32xf32>
    %25 = arith.addf %22, %24 : vector<16x32xf32>
    %c0_10 = arith.constant 0 : index
    %c0_11 = arith.constant 0 : index
    %26 = vector.load %arg6[%c0_10, %c0_11] : memref<32x32xf32, #tpu.memory_space<vmem>>, vector<32x32xf32>
    %cst_12 = arith.constant dense<0.000000e+00> : vector<16x32xf32>
    %27 = tpu.matmul %25, %26, %cst_12 {dimension_numbers = #tpu.dot_dimension_numbers<[1], [0], [0], [1], [0, 0, 1, 1], [], []>} : vector<16x32xf32>, vector<32x32xf32>, vector<16x32xf32> -> vector<16x32xf32>
    %c0_13 = arith.constant 0 : index
    %c0_14 = arith.constant 0 : index
    %28 = vector.load %arg7[%c0_13, %c0_14] : memref<32x32xf32, #tpu.memory_space<vmem>>, vector<32x32xf32>
    %cst_15 = arith.constant dense<0.000000e+00> : vector<16x32xf32>
    %29 = tpu.matmul %25, %28, %cst_15 {dimension_numbers = #tpu.dot_dimension_numbers<[1], [0], [0], [1], [0, 0, 1, 1], [], []>} : vector<16x32xf32>, vector<32x32xf32>, vector<16x32xf32> -> vector<16x32xf32>
    %30 = vector.shape_cast %27 : vector<16x32xf32> to vector<16x4x8xf32>
    %31 = vector.shape_cast %29 : vector<16x32xf32> to vector<16x4x8xf32>
    %c0_16 = arith.constant 0 : index
    %c0_17 = arith.constant 0 : index
    %32 = vector.load %arg5[%c0_16, %c0_17] : memref<32x32xf32, #tpu.memory_space<vmem>>, vector<32x32xf32>
    %cst_18 = arith.constant dense<0.000000e+00> : vector<16x32xf32>
    %33 = tpu.matmul %25, %32, %cst_18 {dimension_numbers = #tpu.dot_dimension_numbers<[1], [0], [0], [1], [0, 0, 1, 1], [], []>} : vector<16x32xf32>, vector<32x32xf32>, vector<16x32xf32> -> vector<16x32xf32>
    %34 = vector.shape_cast %33 : vector<16x32xf32> to vector<16x4x8xf32>
    "tpu.trace_start"() <{level = 10 : i32, message = "qhd,khd->hqk"}> : () -> ()
    %cst_19 = arith.constant dense<0.000000e+00> : vector<4x16x16xf32>
    %35 = tpu.matmul %34, %30, %cst_19 {dimension_numbers = #tpu.dot_dimension_numbers<[2], [2], [0], [0], [0, 1, 0, 0, 1, 0], [1], [1]>} : vector<16x4x8xf32>, vector<16x4x8xf32>, vector<4x16x16xf32> -> vector<4x16x16xf32>
    "tpu.trace_stop"() : () -> ()
    %cst_20 = arith.constant dense<0xFF800000> : vector<4x16xf32>
    %36 = vector.multi_reduction <maximumf>, %35, %cst_20 [2] : vector<4x16x16xf32> to vector<4x16xf32>
    %37 = vector.shape_cast %36 : vector<4x16xf32> to vector<4x16x1xf32>
    %38 = vector.broadcast %37 : vector<4x16x1xf32> to vector<4x16x16xf32>
    %39 = arith.subf %35, %38 : vector<4x16x16xf32>
    %40 = math.exp %39 : vector<4x16x16xf32>
    %cst_21 = arith.constant dense<0.000000e+00> : vector<4x16xf32>
    %41 = vector.multi_reduction <add>, %40, %cst_21 [2] : vector<4x16x16xf32> to vector<4x16xf32>
    "tpu.trace_start"() <{level = 10 : i32, message = "hqk,khd->hqd"}> : () -> ()
    %cst_22 = arith.constant dense<0.000000e+00> : vector<4x16x8xf32>
    %42 = tpu.matmul %40, %31, %cst_22 {dimension_numbers = #tpu.dot_dimension_numbers<[2], [0], [1], [2], [0, 0, 0, 1, 1, 2], [0], [1]>} : vector<4x16x16xf32>, vector<16x4x8xf32>, vector<4x16x8xf32> -> vector<4x16x8xf32>
    "tpu.trace_stop"() : () -> ()
    %43 = tpu.reciprocal %41 : vector<4x16xf32> -> vector<4x16xf32>
    %44 = vector.shape_cast %43 : vector<4x16xf32> to vector<4x16x1xf32>
    %45 = vector.broadcast %44 : vector<4x16x1xf32> to vector<4x16x8xf32>
    %46 = arith.mulf %42, %45 : vector<4x16x8xf32>
    %c0_23 = arith.constant 0 : index
    %c0_24 = arith.constant 0 : index
    %c0_25 = arith.constant 0 : index
    %47 = vector.load %arg8[%c0_23, %c0_24, %c0_25] : memref<4x8x32xf32, #tpu.memory_space<vmem>>, vector<4x8x32xf32>
    "tpu.trace_start"() <{level = 10 : i32, message = "hqd,hdc->hqc"}> : () -> ()
    %cst_26 = arith.constant dense<0.000000e+00> : vector<4x16x32xf32>
    %48 = tpu.matmul %46, %47, %cst_26 {dimension_numbers = #tpu.dot_dimension_numbers<[2], [1], [1], [2], [0, 0, 0, 1, 1, 2], [0], [0]>} : vector<4x16x8xf32>, vector<4x8x32xf32>, vector<4x16x32xf32> -> vector<4x16x32xf32>
    "tpu.trace_stop"() : () -> ()
    %cst_27 = arith.constant dense<0.000000e+00> : vector<16x32xf32>
    %49 = vector.multi_reduction <add>, %48, %cst_27 [0] : vector<4x16x32xf32> to vector<16x32xf32>
    %c0_28 = arith.constant 0 : index
    %c0_29 = arith.constant 0 : index
    %50 = vector.load %arg9[%c0_28, %c0_29] : memref<1x32xf32, #tpu.memory_space<vmem>>, vector<1x32xf32>
    %51 = vector.broadcast %50 : vector<1x32xf32> to vector<16x32xf32>
    %52 = arith.addf %49, %51 : vector<16x32xf32>
    %53 = arith.addf %1, %52 : vector<16x32xf32>
    %c0_30 = arith.constant 0 : index
    %c0_31 = arith.constant 0 : index
    %54 = vector.load %arg10[%c0_30, %c0_31] : memref<1x32xf32, #tpu.memory_space<vmem>>, vector<1x32xf32>
    %55 = vector.broadcast %54 : vector<1x32xf32> to vector<16x32xf32>
    %56 = arith.mulf %53, %55 : vector<16x32xf32>
    %cst_32 = arith.constant dense<0.000000e+00> : vector<16xf32>
    %57 = vector.multi_reduction <add>, %56, %cst_32 [1] : vector<16x32xf32> to vector<16xf32>
    %58 = vector.shape_cast %57 : vector<16xf32> to vector<16x1xf32>
    %cst_33 = arith.constant 3.200000e+01 : f32
    %59 = vector.broadcast %cst_33 : f32 to vector<16x1xf32>
    %60 = arith.divf %58, %59 : vector<16x1xf32>
    %61 = vector.broadcast %60 : vector<16x1xf32> to vector<16x32xf32>
    %62 = arith.subf %56, %61 : vector<16x32xf32>
    %63 = arith.mulf %62, %62 : vector<16x32xf32>
    %cst_34 = arith.constant dense<0.000000e+00> : vector<16xf32>
    %64 = vector.multi_reduction <add>, %63, %cst_34 [1] : vector<16x32xf32> to vector<16xf32>
    %65 = vector.shape_cast %64 : vector<16xf32> to vector<16x1xf32>
    %cst_35 = arith.constant 3.200000e+01 : f32
    %66 = vector.broadcast %cst_35 : f32 to vector<16x1xf32>
    %67 = arith.divf %65, %66 : vector<16x1xf32>
    %68 = vector.broadcast %60 : vector<16x1xf32> to vector<16x32xf32>
    %69 = arith.subf %56, %68 : vector<16x32xf32>
    %cst_36 = arith.constant 9.99999974E-6 : f32
    %70 = vector.broadcast %cst_36 : f32 to vector<16x1xf32>
    %71 = arith.addf %67, %70 : vector<16x1xf32>
    %72 = math.rsqrt %71 : vector<16x1xf32>
    %73 = vector.broadcast %72 : vector<16x1xf32> to vector<16x32xf32>
    %74 = arith.mulf %69, %73 : vector<16x32xf32>
    %c0_37 = arith.constant 0 : index
    %c0_38 = arith.constant 0 : index
    %75 = vector.load %arg11[%c0_37, %c0_38] : memref<1x32xf32, #tpu.memory_space<vmem>>, vector<1x32xf32>
    %76 = vector.broadcast %75 : vector<1x32xf32> to vector<16x32xf32>
    %77 = arith.mulf %74, %76 : vector<16x32xf32>
    %c0_39 = arith.constant 0 : index
    %c0_40 = arith.constant 0 : index
    %78 = vector.load %arg12[%c0_39, %c0_40] : memref<1x32xf32, #tpu.memory_space<vmem>>, vector<1x32xf32>
    %79 = vector.broadcast %78 : vector<1x32xf32> to vector<16x32xf32>
    %80 = arith.addf %77, %79 : vector<16x32xf32>
    %c0_41 = arith.constant 0 : index
    %c0_42 = arith.constant 0 : index
    %81 = vector.load %arg13[%c0_41, %c0_42] : memref<32x128xf32, #tpu.memory_space<vmem>>, vector<32x128xf32>
    %cst_43 = arith.constant dense<0.000000e+00> : vector<16x128xf32>
    %82 = tpu.matmul %80, %81, %cst_43 {dimension_numbers = #tpu.dot_dimension_numbers<[1], [0], [0], [1], [0, 0, 1, 1], [], []>} : vector<16x32xf32>, vector<32x128xf32>, vector<16x128xf32> -> vector<16x128xf32>
    %c0_44 = arith.constant 0 : index
    %c0_45 = arith.constant 0 : index
    %83 = vector.load %arg14[%c0_44, %c0_45] : memref<1x128xf32, #tpu.memory_space<vmem>>, vector<1x128xf32>
    %84 = vector.broadcast %83 : vector<1x128xf32> to vector<16x128xf32>
    %85 = arith.addf %82, %84 : vector<16x128xf32>
    %cst_46 = arith.constant 5.000000e-01 : f32
    %86 = vector.broadcast %cst_46 : f32 to vector<16x128xf32>
    %87 = arith.mulf %86, %85 : vector<16x128xf32>
    %cst_47 = arith.constant 0.707106769 : f32
    %88 = vector.broadcast %cst_47 : f32 to vector<16x128xf32>
    %89 = arith.mulf %85, %88 : vector<16x128xf32>
    %90 = math.absf %89 : vector<16x128xf32>
    %cst_48 = arith.constant 0.327591091 : f32
    %91 = vector.broadcast %cst_48 : f32 to vector<16x128xf32>
    %92 = arith.mulf %91, %90 : vector<16x128xf32>
    %cst_49 = arith.constant 1.000000e+00 : f32
    %93 = vector.broadcast %cst_49 : f32 to vector<16x128xf32>
    %94 = arith.addf %93, %92 : vector<16x128xf32>
    %cst_50 = arith.constant 1.000000e+00 : f32
    %95 = vector.broadcast %cst_50 : f32 to vector<16x128xf32>
    %96 = arith.divf %95, %94 : vector<16x128xf32>
    %cst_51 = arith.constant 1.06140542 : f32
    %97 = vector.broadcast %cst_51 : f32 to vector<16x128xf32>
    %98 = arith.mulf %97, %96 : vector<16x128xf32>
    %cst_52 = arith.constant 1.45315206 : f32
    %99 = vector.broadcast %cst_52 : f32 to vector<16x128xf32>
    %100 = arith.subf %98, %99 : vector<16x128xf32>
    %101 = arith.mulf %100, %96 : vector<16x128xf32>
    %cst_53 = arith.constant 1.42141378 : f32
    %102 = vector.broadcast %cst_53 : f32 to vector<16x128xf32>
    %103 = arith.addf %101, %102 : vector<16x128xf32>
    %104 = arith.mulf %103, %96 : vector<16x128xf32>
    %cst_54 = arith.constant 0.284496725 : f32
    %105 = vector.broadcast %cst_54 : f32 to vector<16x128xf32>
    %106 = arith.subf %104, %105 : vector<16x128xf32>
    %107 = arith.mulf %106, %96 : vector<16x128xf32>
    %cst_55 = arith.constant 0.254829586 : f32
    %108 = vector.broadcast %cst_55 : f32 to vector<16x128xf32>
    %109 = arith.addf %107, %108 : vector<16x128xf32>
    %110 = arith.mulf %109, %96 : vector<16x128xf32>
    %cst_56 = arith.constant 0.000000e+00 : f32
    %111 = vector.broadcast %cst_56 : f32 to vector<16x128xf32>
    %112 = arith.subf %111, %90 : vector<16x128xf32>
    %113 = arith.mulf %112, %90 : vector<16x128xf32>
    %114 = math.exp %113 : vector<16x128xf32>
    %115 = arith.mulf %110, %114 : vector<16x128xf32>
    %cst_57 = arith.constant 1.000000e+00 : f32
    %116 = vector.broadcast %cst_57 : f32 to vector<16x128xf32>
    %117 = arith.subf %116, %115 : vector<16x128xf32>
    %cst_58 = arith.constant 0.000000e+00 : f32
    %118 = vector.broadcast %cst_58 : f32 to vector<16x128xf32>
    %119 = arith.cmpf oge, %89, %118 : vector<16x128xf32>
    %cst_59 = arith.constant 0.000000e+00 : f32
    %120 = vector.broadcast %cst_59 : f32 to vector<16x128xf32>
    %121 = arith.subf %120, %117 : vector<16x128xf32>
    %122 = arith.select %119, %117, %121 : vector<16x128xi1>, vector<16x128xf32>
    %cst_60 = arith.constant 1.000000e+00 : f32
    %123 = vector.broadcast %cst_60 : f32 to vector<16x128xf32>
    %124 = arith.addf %123, %122 : vector<16x128xf32>
    %125 = arith.mulf %87, %124 : vector<16x128xf32>
    %c0_61 = arith.constant 0 : index
    %c0_62 = arith.constant 0 : index
    %126 = vector.load %arg15[%c0_61, %c0_62] : memref<128x32xf32, #tpu.memory_space<vmem>>, vector<128x32xf32>
    %cst_63 = arith.constant dense<0.000000e+00> : vector<16x32xf32>
    %127 = tpu.matmul %125, %126, %cst_63 {dimension_numbers = #tpu.dot_dimension_numbers<[1], [0], [0], [1], [0, 0, 1, 1], [], []>} : vector<16x128xf32>, vector<128x32xf32>, vector<16x32xf32> -> vector<16x32xf32>
    %c0_64 = arith.constant 0 : index
    %c0_65 = arith.constant 0 : index
    %128 = vector.load %arg16[%c0_64, %c0_65] : memref<1x32xf32, #tpu.memory_space<vmem>>, vector<1x32xf32>
    %129 = vector.broadcast %128 : vector<1x32xf32> to vector<16x32xf32>
    %130 = arith.addf %127, %129 : vector<16x32xf32>
    %131 = arith.addf %56, %130 : vector<16x32xf32>
    %c0_66 = arith.constant 0 : index
    %c0_67 = arith.constant 0 : index
    %132 = vector.load %arg10[%c0_66, %c0_67] : memref<1x32xf32, #tpu.memory_space<vmem>>, vector<1x32xf32>
    %133 = vector.broadcast %132 : vector<1x32xf32> to vector<16x32xf32>
    %134 = arith.mulf %131, %133 : vector<16x32xf32>
    %c0_68 = arith.constant 0 : index
    %c0_69 = arith.constant 0 : index
    %c0_70 = arith.constant 0 : index
    %135 = vector.load %arg17[%c0_68, %c0_69, %c0_70] : memref<1x16x32xf32, #tpu.memory_space<vmem>>, vector<1x16x32xf32>
    %136 = vector.shape_cast %135 : vector<1x16x32xf32> to vector<16x32xf32>
    %137 = vector.shape_cast %134 : vector<16x32xf32> to vector<1x16x32xf32>
    tpu.vector_store %arg17[%c0_68, %c0_69, %c0_70], %137 {strides = array<i32>} : memref<1x16x32xf32, #tpu.memory_space<vmem>>, vector<1x16x32xf32>,
    return
  }
  func.func @transform_0(%arg0: i32, %arg1: i32) -> (i32, i32, i32) {
    %c0_i32 = arith.constant 0 : i32
    %c0_i32_0 = arith.constant 0 : i32
    %c0_i32_1 = arith.constant 0 : i32
    return %arg0, %c0_i32, %c0_i32_0 : i32, i32, i32
  }
  func.func @transform_1(%arg0: i32, %arg1: i32) -> (i32, i32) {
    %c0_i32 = arith.constant 0 : i32
    %c0_i32_0 = arith.constant 0 : i32
    %c0_i32_1 = arith.constant 0 : i32
    return %c0_i32, %c0_i32_0 : i32, i32
  }
  func.func @transform_2(%arg0: i32, %arg1: i32) -> (i32, i32) {
    %c0_i32 = arith.constant 0 : i32
    %c0_i32_0 = arith.constant 0 : i32
    %c0_i32_1 = arith.constant 0 : i32
    return %c0_i32, %c0_i32_0 : i32, i32
  }
  func.func @transform_3(%arg0: i32, %arg1: i32) -> (i32, i32) {
    %c0_i32 = arith.constant 0 : i32
    %c0_i32_0 = arith.constant 0 : i32
    %c0_i32_1 = arith.constant 0 : i32
    return %c0_i32, %c0_i32_0 : i32, i32
  }
  func.func @transform_4(%arg0: i32, %arg1: i32) -> (i32, i32) {
    %c0_i32 = arith.constant 0 : i32
    %c0_i32_0 = arith.constant 0 : i32
    %c0_i32_1 = arith.constant 0 : i32
    return %c0_i32, %c0_i32_0 : i32, i32
  }
  func.func @transform_5(%arg0: i32, %arg1: i32) -> (i32, i32) {
    %c0_i32 = arith.constant 0 : i32
    %c0_i32_0 = arith.constant 0 : i32
    %c0_i32_1 = arith.constant 0 : i32
    return %c0_i32, %c0_i32_0 : i32, i32
  }
  func.func @transform_6(%arg0: i32, %arg1: i32) -> (i32, i32, i32) {
    %c0_i32 = arith.constant 0 : i32
    %c0_i32_0 = arith.constant 0 : i32
    %c0_i32_1 = arith.constant 0 : i32
    %c0_i32_2 = arith.constant 0 : i32
    return %c0_i32, %c0_i32_0, %c0_i32_1 : i32, i32, i32
  }
  func.func @transform_7(%arg0: i32, %arg1: i32) -> (i32, i32) {
    %c0_i32 = arith.constant 0 : i32
    %c0_i32_0 = arith.constant 0 : i32
    %c0_i32_1 = arith.constant 0 : i32
    return %c0_i32, %c0_i32_0 : i32, i32
  }
  func.func @transform_8(%arg0: i32, %arg1: i32) -> (i32, i32) {
    %c0_i32 = arith.constant 0 : i32
    %c0_i32_0 = arith.constant 0 : i32
    %c0_i32_1 = arith.constant 0 : i32
    return %c0_i32, %c0_i32_0 : i32, i32
  }
  func.func @transform_9(%arg0: i32, %arg1: i32) -> (i32, i32) {
    %c0_i32 = arith.constant 0 : i32
    %c0_i32_0 = arith.constant 0 : i32
    %c0_i32_1 = arith.constant 0 : i32
    return %c0_i32, %c0_i32_0 : i32, i32
  }
  func.func @transform_10(%arg0: i32, %arg1: i32) -> (i32, i32) {
    %c0_i32 = arith.constant 0 : i32
    %c0_i32_0 = arith.constant 0 : i32
    %c0_i32_1 = arith.constant 0 : i32
    return %c0_i32, %c0_i32_0 : i32, i32
  }
  func.func @transform_11(%arg0: i32, %arg1: i32) -> (i32, i32) {
    %c0_i32 = arith.constant 0 : i32
    %c0_i32_0 = arith.constant 0 : i32
    %c0_i32_1 = arith.constant 0 : i32
    return %c0_i32, %c0_i32_0 : i32, i32
  }
  func.func @transform_12(%arg0: i32, %arg1: i32) -> (i32, i32) {
    %c0_i32 = arith.constant 0 : i32
    %c0_i32_0 = arith.constant 0 : i32
    %c0_i32_1 = arith.constant 0 : i32
    return %c0_i32, %c0_i32_0 : i32, i32
  }
  func.func @transform_13(%arg0: i32, %arg1: i32) -> (i32, i32) {
    %c0_i32 = arith.constant 0 : i32
    %c0_i32_0 = arith.constant 0 : i32
    %c0_i32_1 = arith.constant 0 : i32
    return %c0_i32, %c0_i32_0 : i32, i32
  }
  func.func @transform_14(%arg0: i32, %arg1: i32) -> (i32, i32) {
    %c0_i32 = arith.constant 0 : i32
    %c0_i32_0 = arith.constant 0 : i32
    %c0_i32_1 = arith.constant 0 : i32
    return %c0_i32, %c0_i32_0 : i32, i32
  }
  func.func @transform_15(%arg0: i32, %arg1: i32) -> (i32, i32, i32) {
    %c0_i32 = arith.constant 0 : i32
    %c0_i32_0 = arith.constant 0 : i32
    return %arg0, %arg1, %c0_i32 : i32, i32, i32
  }
}

</mosaic_0001>

<bundles_post_ra>
// kernel: tpu_custom_call.1
= control target key start
LH: loop header
LB: loop body
LE: loop exit
PB: predicated region body
PF: predicated region fallthrough
CT: control target
= control target key end

     0   :  { %20 = vsyncpa [#allocation3], 0  ;;  %s3576_s0 = inlined_call_operand.vmem [shape: f32[2,16,32], index: 0, kind: input, shape index: {}]   ;;  %s3577_s1 = inlined_call_operand.vmem [shape: f32[1,32], index: 1, kind: input, shape index: {}]   ;;  %s3578_s2 = inlined_call_operand.vmem [shape: f32[1,32], index: 2, kind: input, shape index: {}]   ;;  %s3579_s3 = inlined_call_operand.vmem [shape: f32[32,32], index: 3, kind: input, shape index: {}]   ;;  %s3580_s4 = inlined_call_operand.vmem [shape: f32[32,32], index: 4, kind: input, shape index: {}]   ;;  %s3581_s5 = inlined_call_operand.vmem [shape: f32[32,32], index: 5, kind: input, shape index: {}]   ;;  %s3582_s6 = inlined_call_operand.vmem [shape: f32[4,8,32], index: 6, kind: input, shape index: {}]   ;;  %s3583_s7 = inlined_call_operand.vmem [shape: f32[1,32], index: 7, kind: input, shape index: {}]   ;;  %s3584_s8 = inlined_call_operand.vmem [shape: f32[1,32], index: 8, kind: input, shape index: {}]   ;;  %s3585_s9 = inlined_call_operand.vmem [shape: f32[1,32], index: 9, kind: input, shape index: {}]   ;;  %s3586_s10 = inlined_call_operand.vmem [shape: f32[1,32], index: 10, kind: input, shape index: {}]   ;;  %s3587_s11 = inlined_call_operand.hbm [shape: f32[32,128], index: 11, kind: input, shape index: {}]   ;;  %s3588_s12 = inlined_call_operand.vmem [shape: f32[1,128], index: 12, kind: input, shape index: {}]   ;;  %s3589_s13 = inlined_call_operand.vmem [shape: f32[128,32], index: 13, kind: input, shape index: {}]   ;;  %s3590_s14 = inlined_call_operand.vmem [shape: f32[1,32], index: 14, kind: input, shape index: {}]   ;;  %s3591_s15 = inlined_call_operand.hbm [shape: f32[2,16,32], index: 15, kind: output, shape index: {}]  }
   0x1   :  { %21 = vsyncpa [#allocation4], 0 }
   0x2   :  { %23 = vsyncpa [#allocation4 + $0x1], 0  ;;  %s3191_s18 = smov 0   ;;  %s3193_s19 = smov 0  }
   0x3   :  { %s3195_s20 = smov 0   ;;  %s3197_s21 = smov 0  }
   0x4   :  { %s3199_s22 = smov 0   ;;  %s3201_s23 = smov 0  }
   0x5 LB: > { %3603 = sst [smem:[#allocation8_spill]] %s3080_s18  ;;  %s2483_s24 = sadd.s32 4294967295, %s3100_s23   ;;  %s3100_s23 = sphi %s3201_s23, %s29_s23   ;;  %s3096_s22 = sphi %s3199_s22, %s3625_s22   ;;  %s3092_s21 = sphi %s3197_s21, %s3624_s21   ;;  %s3088_s20 = sphi %s3195_s20, %s3623_s20   ;;  %s3084_s19 = sphi %s3193_s19, %s3627_s19   ;;  %s3080_s18 = sphi %s3191_s18, %s3626_s18  }
   0x6   : > { %3604 = sst [smem:[#allocation9_spill]] %s3088_s20  ;;  %s2484_s25 = sadd.s32 4294967294, %s3100_s23  }
   0x7   : > { %3605 = sst [smem:[#allocation10_spill]] %s3096_s22  ;;  %s41_s26 = sadd.s32 1, %s3096_s22 }
   0x8   : > { %3606 = sst [smem:[#allocation11_spill]] %s3100_s23  ;;  %s370_s27 = sadd.s32 1, %s3088_s20 }
   0x9   : > { %p43_p0 = scmp.ge.s32.totalorder %s41_s26, 2  ;;  %p380_p1 = scmp.ne.s32.totalorder %s3088_s20, %s3084_s19 }
   0xa   : > { %p381_p2 = scmp.eq.s32.totalorder %s2483_s24, 1  ;;  %p386_p3 = scmp.ne.s32.totalorder %s3084_s19, %s3080_s18 }
   0xb   : > { %s3629_s26 = smov (%p43_p0, %s41_s26), 0  ;;  %p387_p5 = scmp.eq.s32.totalorder %s2484_s25, 1 }
   0xc   : > { %3607 = sst [smem:[#allocation12_spill]] %s3629_s26  ;;  %p3231_p4 = por %p381_p2, %p380_p1 }
   0xd   : > { %s365_s29 = ssub.s32 %s3096_s22, %s3629_s26  ;;  %p2485_p6 = scmp.ge.s32.totalorder %s3100_s23, 1 }
   0xe   : > { %s3608_s28 = scalar_select %p3231_p4, 1, 0 }
   0xf   : > { %p368_p7 = scmp.eq.s32.totalorder %s365_s29, 0  ;;  %p3238_p8 = por %p387_p5, %p386_p3 }
  0x10   : > { %p394_p9 = scmp.lt.s32.totalorder %s3100_s23, 3  ;;  %p3250_p11 = scmp.eq.s32.totalorder %s2483_s24, 0 }
  0x11   : > { %s3609_s30 = scalar_select %p3238_p8, 1, 0 }
  0x12   : > { %s3244_s16 = scalar_select %p368_p7, %s3088_s20, %s370_s27  }
  0x13   : > { %3610 = sst [smem:[#allocation13_spill]] %s3609_s30  ;;  %p3246_p10 = pnand %p2485_p6, %p394_p9 }
  0x14   : > { %3611 = sst [smem:[#allocation14_spill]] %s3244_s16  ;;  %s3102_s25 = smov [#allocation2]  }
  0x15   : > { %s3612_s17 = scalar_select %p3246_p10, 1, 0 }
  0x16   : > { %s3613_s18 = scalar_select %p3250_p11, 1, 0 }
  0x17   : > { %p2859_p12 = pneg %p3246_p10  ;;  %s436_s29 = sshll.u32 %s3102_s25, 4  ;;  %s437_s29 = int_to_ptr.vmem [resolvable:$true] %s436_s29 }
  0x18   : > { %s2990_s16 = scalar_lea.hbm %s3587_s11, 512 }
  0x19   : > { %p3258_p13 = pnand %p3250_p11, %p2859_p12  ;;  %p2991_p0 = scmp.ne.s32.totalorder %s3587_s11, %s2990_s16 }
  0x1a   : > { %p2997_p5 = scmp.lt.u32.totalorder %s2990_s16, %s3587_s11 }
  0x1b   : > { %p2992_p1 = pneg %p3258_p13 }
  0x1d   : > { %p2993_p2 = pnand %p2992_p1, %p2991_p0 }
  0x1f   : > { %p2994_p3 = pneg %p2993_p2 }
  0x21   : > { %p2999_p6 = pnand %p2997_p5, %p2994_p3 }
  0x23   : > { %3002 = shalt.err (!%p2999_p6)
}
  0x24   : > { %s3003_s23 = scalar_lea.vmem %s437_s29, 512  ;;  %p3011_p8 = scmp.lt.s32.totalorder %s437_s29, %s437_s29 }
  0x25   : > { %p3004_p7 = scmp.ne.s32.totalorder %s437_s29, %s3003_s23  ;;  %p3012_p4 = scmp.lt.s32.totalorder %s3003_s23, %s3003_s23 }
  0x27   : > { %p3006_p9 = pnand %p3004_p7, %p2992_p1  ;;  %p3013_p11 = por %p3012_p4, %p3011_p8 }
  0x29   : > { %p3007_p12 = pneg %p3006_p9 }
  0x2b   : > { %p3014_p10 = pnand %p3013_p11, %p3007_p12 }
  0x2d   : > { %3017 = shalt.err (!%p3014_p10)
}
  0x2e   : > { %s3103_s20 = smov 128   ;;  %s3104_s22 = smov 8  }
  0x2f   : > { %2862 = dma.hbm_to_vmem [thread:$0]  (!%p3258_p13), %s3587_s11, 512, %s437_s29, [#allocation3], %s3103_s20, %s3103_s20, %s3104_s22  }
  0x30   : > { %p3615_p0 = scmp.ne.s32.totalorder %s3612_s17, 0 }
  0x31   : > { %p3616_p2 = scmp.ne.s32.totalorder (!%p3615_p0), %s3613_s18, 0 }
  0x32   : > { %469 = sbr.rel (%p3615_p0) target bundleno = 2479 (0x9af), region = 80 }
  0x39   : > { %3071 = dma.done.wait (%p3616_p2), [#allocation3], 512  }
  0x3a   : > { %3073 = vsyncadd (%p3616_p2), [#allocation3], 4294966784  ;;  %p517_p4 = scmp.lt.s32.totalorder %s3092_s21, 1  ;;  %vm525_vm0 = vcmask 261120   ;;  %v571_v14 = vld [vmem:[%s3580_s4] sm:$0xff]  ;;  %v572_v15 = vld [vmem:[%s3580_s4 + $0x8] sm:$0xff] }
  0x3b   : > { %v573_v16 = vld [vmem:[%s3580_s4 + $0x10] sm:$0xff]  ;;  %v2773_v17 = vpack.c.bf16 %v572_v15, %v571_v14  ;;  %v574_v18 = vld [vmem:[%s3580_s4 + $0x18] sm:$0xff]  ;;  %v656_v20 = vld [vmem:[%s3581_s5] sm:$0xff]  ;;  %s3105_s22 = smov 120   ;;  %s3106_s27 = smov 112   ;;  %vm996_vm1 = vcmask 64512  }
  0x3c   : > { %s518_s23 = scalar_select %p517_p4, %s3092_s21, 1  ;;  %v2777_v19 = vpack.c.bf16 %v574_v18, %v573_v16  ;;  %v657_v21 = vld [vmem:[%s3581_s5 + $0x8] sm:$0xff]  ;;  %v2493_v30 = vld [vmem:[%s3577_s1] ss:$0 sm:$0xff]  ;;  %v658_v37 = vld [vmem:[%s3581_s5 + $0x10] sm:$0xff]  ;;  %vm1313_vm2 = vcmask 130048  }
  0x3d   : > { %2774 = vmatprep.subr.bf16.mxu0 %v2773_v17  ;;  %v2781_v22 = vpack.c.bf16 %v657_v21, %v656_v20  ;;  %v2494_v32 = vld [vmem:[%s3578_s2] ss:$0 sm:$0xff]  ;;  %v659_v38 = vld [vmem:[%s3581_s5 + $0x18] sm:$0xff]  ;;  %v776_v43 = vld [vmem:[%s3579_s3 + $0x8] sm:$0xff]  ;;  %s3107_s24 = smov 104   ;;  %s514_s16 = sand.u32 1, %s3084_s19  }
  0x3e   : > { %s2542_s30 = sshll.u32 %s518_s23, 4  ;;  %2776 = vmatpush3.bf16.msra.mxu0 %v2773_v17  ;;  %v2785_v41 = vpack.c.bf16 %v659_v38, %v658_v37  ;;  %v775_v42 = vld [vmem:[%s3579_s3] sm:$0xff]  ;;  %v777_v45 = vld [vmem:[%s3579_s3 + $0x10] sm:$0xff]  ;;  %v778_v46 = vld [vmem:[%s3579_s3 + $0x18] sm:$0xff]  ;;  %s2490_s26 = sshll.u32 %s514_s16, 4 }
  0x3f   : > { %s521_s25 = scalar_lea.vmem %s3576_s0, %s2542_s30  ;;  %2778 = vmatprep.subr.bf16.mxu0 %v2777_v19  ;;  %v2789_v44 = vpack.c.bf16 %v776_v43, %v775_v42  ;;  %v2793_v47 = vpack.c.bf16 %v778_v46, %v777_v45  ;;  %s2543_s17 = sshll.u32 %s3092_s21, 8 }
  0x40   : > { %v3289_v0 = vld [vmem:[%s521_s25] sm:$0xff]  ;;  %v3291_v1 = vld [vmem:[%s521_s25 + $0x8] sm:$0xff]  ;;  %s516_s29 = scalar_lea.vmem [#allocation5], %s2490_s26  ;;  %s3530_s21 = scalar_lea.sflag [#allocation4], %s514_s16 }
  0x41   : > { %v526_v2 = vsel %vm525_vm0, %v3289_v0, 0.0  ;;  %v529_v3 = vsel %vm525_vm0, %v3291_v1, 0.0  ;;  %s2398_s20 = sshll.u32 %s516_s29, 4  ;;  %p3617_p10 = scmp.ne.s32.totalorder %s3608_s28, 0  ;;  %s3525_s20 = int_to_ptr.vmem [resolvable:$true] %s2398_s20 }
  0x42   : > { %527 = vadd.xlane.f32.xlu0 %v526_v2  ;;  %2780 = vmatpush3.bf16.msra.mxu0 %v2777_v19  ;;  %s3018_s23 = scalar_lea.vmem %s3525_s20, 256  ;;  %s3108_s30 = smov [#allocation5]  }
  0x43   : > { %2782 = vmatprep.subr.bf16.mxu0 %v2781_v22  ;;  %p3019_p8 = scmp.ne.s32.totalorder %s3525_s20, %s3018_s23  ;;  %s3022_s26 = sshll.u32 %s3108_s30, 4  ;;  %s3023_s26 = int_to_ptr.vmem [resolvable:$false] %s3022_s26 }
  0x44   : > { %s3024_s25 = scalar_lea.vmem %s3023_s26, 512  ;;  %p3025_p1 = scmp.lt.s32.totalorder %s3525_s20, %s3023_s26 }
  0x45   : > { %p3020_p11 = pnand %p3019_p8, %p3617_p10  ;;  %p3026_p3 = scmp.lt.s32.totalorder %s3024_s25, %s3018_s23 }
  0x46   : > { %530 = vadd.xlane.f32.xlu0 %v529_v3 }
  0x47   : > { %p3021_p13 = pneg %p3020_p11  ;;  %p3027_p5 = por %p3026_p3, %p3025_p1 }
  0x49   : > { %p3028_p6 = pnand %p3027_p5, %p3021_p13 }
  0xcf   : > { %v528_v4 = vpop.xlane.xlu0 %527 }
  0xd0   : > { %v533_v5 = vmul.f32 0.03125, %v528_v4 }
  0xd2   : > { %v535_v6 = vsub.f32 %v3289_v0, %v533_v5 }
  0xd3   : > { %v531_v7 = vpop.xlane.xlu0 %530 }
  0xd4   : > { %v534_v8 = vmul.f32 0.03125, %v531_v7  ;;  %v537_v9 = vmul.f32 %v535_v6, %v535_v6 }
  0xd6   : > { %v536_v10 = vsub.f32 %v3291_v1, %v534_v8  ;;  %v539_v11 = vsel %vm525_vm0, %v537_v9, 0.0 }
  0xd7   : > { %540 = vadd.xlane.f32.xlu1 %v539_v11 }
  0xd8   : > { %v538_v12 = vmul.f32 %v536_v10, %v536_v10 }
  0xda   : > { %v542_v13 = vsel %vm525_vm0, %v538_v12, 0.0 }
  0xdb   : > { %543 = vadd.xlane.f32.xlu1 %v542_v13 }
 0x164   : > { %v541_v23 = vpop.xlane.xlu1 %540 }
 0x165   : > { %v545_v24 = vmul.f32 0.03125, %v541_v23 }
 0x167   : > { %v547_v25 = vadd.f32 1e-05, %v545_v24 }
 0x168   : > { %v544_v26 = vpop.xlane.xlu1 %543 }
 0x169   : > { %2942 = vrsqrt.f32 %v547_v25  ;;  %v546_v27 = vmul.f32 0.03125, %v544_v26 }
 0x16b   : > { %v548_v28 = vadd.f32 1e-05, %v546_v27 }
 0x16d   : > { %2944 = vrsqrt.f32 %v548_v28 }
 0x173   : > { %v2943_v29 = vpop.eup %2942 }
 0x174   : > { %v551_v31 = vmul.f32 %v2943_v29, %v535_v6 }
 0x176   : > { %v560_v33 = vmul.f32 %v2493_v30, %v551_v31 }
 0x177   : > { %v2945_v34 = vpop.eup %2944 }
 0x178   : > { %v552_v35 = vmul.f32 %v2945_v34, %v536_v10  ;;  %v569_v36 = vadd.f32 %v2494_v32, %v560_v33 }
 0x17a   : > { %v561_v39 = vmul.f32 %v2493_v30, %v552_v35  ;;  %2634 = vmatprep.mubr.msk.f32.mxu0 %vm525_vm0, %v569_v36 }
 0x17c   : > { %v570_v40 = vadd.f32 %v2494_v32, %v561_v39 }
 0x17e   : > { %2635 = vmatmul.mubr.msk.f32.vlgmr.msra.gmra.mrb[0].mxu0 %vm525_vm0, %v570_v40 }
 0x17f   : > { %2784 = vmatpush3.bf16.msra.mxu0 %v2781_v22  ;;  %2645 = vmatprep.mubr.msk.f32.mxu0 %vm525_vm0, %v569_v36 }
 0x180   : > { %2786 = vmatprep.subr.bf16.mxu0 %v2785_v41 }
 0x183   : > { %2788 = vmatpush3.bf16.msra.mxu0 %v2785_v41 }
 0x184   : > { %2790 = vmatprep.subr.bf16.mxu0 %v2789_v44 }
 0x186   : > { %2646 = vmatmul.mubr.msk.f32.vlgmr.msra.gmra.mrb[2].mxu0 %vm525_vm0, %v570_v40 }
 0x187   : > { %2792 = vmatpush3.bf16.msra.mxu0 %v2789_v44  ;;  %2656 = vmatprep.mubr.msk.f32.mxu0 %vm525_vm0, %v569_v36 }
 0x188   : > { %2794 = vmatprep.subr.bf16.mxu0 %v2793_v47 }
 0x18b   : > { %2796 = vmatpush3.bf16.msra.mxu0 %v2793_v47 }
 0x18e   : > { %2657 = vmatmul.mubr.msk.f32.vlgmr.msra.gmra.mrb[4].mxu0 %vm525_vm0, %v570_v40 }
 0x251   : > { %v2636_v48 = vpop.f32.mrb[0].mxu0 }
 0x252   : > { %739 = vrot.lane.b32.xlu1 %v2636_v48, %s3105_s22  ;;  %v647_v49 = vpop.f32.mrb[1].mxu0 }
 0x253   : > { %737 = vrot.lane.b32.xlu0 %v647_v49, %s3105_s22 }
 0x256   : > { %745 = vrot.lane.b32.xlu1 %v2636_v48, %s3106_s27 }
 0x257   : > { %749 = vrot.lane.b32.xlu0 %v647_v49, %s3107_s24 }
 0x259   : > { %v2647_v50 = vpop.f32.mrb[2].mxu0 }
 0x25a   : > { %v726_v51 = vpop.f32.mrb[3].mxu0  ;;  %743 = vrot.lane.b32.xlu1 %v647_v49, %s3106_s27 }
 0x25b   : > { %v2797_v52 = vpack.c.bf16 %v2647_v50, %v726_v51  ;;  %v3354_v53 = vpack.i.bf16 %v2647_v50, %v726_v51 }
 0x25e   : > { %751 = vrot.lane.b32.xlu1 %v2636_v48, %s3107_s24 }
 0x261   : > { %v2658_v54 = vpop.f32.mrb[4].mxu0 }
 0x262   : > { %v845_v55 = vpop.f32.mrb[5].mxu0  ;;  %858 = vrot.lane.b32.xlu1 %v2658_v54, %s3105_s22 }
 0x263   : > { %2661 = vmatprep.mubr.msk.f32.mxu0 %vm996_vm1, %v845_v55 }
 0x266   : > { %862 = vrot.lane.b32.xlu1 %v2658_v54, %s3106_s27 }
 0x26a   : > { %866 = vrot.lane.b32.xlu1 %v2658_v54, %s3107_s24 }
 0x275   : > { %868 = vxpose.xlu0.b32.start [1/2] (short) (narrow) %v647_v49, 8 }
 0x279   : > { %869 = vxpose.xlu0.b32.end [2/2] (short) (narrow) %v2636_v48, 8 }
 0x2a2   : > { %856 = vrot.lane.b32.xlu0 %v845_v55, %s3105_s22 }
 0x2a6   : > { %860 = vrot.lane.b32.xlu0 %v845_v55, %s3106_s27 }
 0x2aa   : > { %864 = vrot.lane.b32.xlu0 %v845_v55, %s3107_s24 }
 0x2c4   : > { %v740_v56 = vpop.permute.xlu1 %739 }
 0x2c5   : > { %v738_v57 = vpop.permute.xlu0 %737 }
 0x2c6   : > { %900 = vxpose.xlu1.b32.start [1/2] (short) (narrow) %v738_v57, 8 }
 0x2c8   : > { %v746_v58 = vpop.permute.xlu1 %745 }
 0x2c9   : > { %v750_v60 = vpop.permute.xlu0 %749 }
 0x2ca   : > { %901 = vxpose.xlu1.b32.end [2/2] (short) (narrow) %v740_v56, 8 }
 0x2cc   : > { %v744_v59 = vpop.permute.xlu1 %743 }
 0x2cd   : > { %932 = vxpose.xlu0.b32.start [1/2] (short) (narrow) %v744_v59, 8 }
 0x2d0   : > { %v752_v61 = vpop.permute.xlu1 %751 }
 0x2d1   : > { %933 = vxpose.xlu0.b32.end [2/2] (short) (narrow) %v746_v58, 8 }
 0x2d4   : > { %v859_v3 = vpop.permute.xlu1 %858 }
 0x2d5   : > { %964 = vxpose.xlu0.b32.start [1/2] (short) (narrow) %v750_v60, 8 }
 0x2d8   : > { %v863_v4 = vpop.permute.xlu1 %862 }
 0x2d9   : > { %965 = vxpose.xlu0.b32.end [2/2] (short) (narrow) %v752_v61, 8 }
 0x2dc   : > { %v867_v5 = vpop.permute.xlu1 %866 }
 0x2f5   : > { %v884_v62 = vpop.trf.xlu0 }
 0x2f6   : > { %2659 = vmatprep.subr.mxu0 %v884_v62 }
 0x2f7   : > { %2660 = vmatpush3.msra.mxu0 %v884_v62 }
 0x2f8   : > { %2662 = vmatmul.mubr.msk.f32.vlgmr.msra.gmra.mrb[6].mxu0 %vm996_vm1, %v2658_v54 }
 0x314   : > { %v857_v63 = vpop.permute.xlu0 %856 }
 0x315   : > { %2666 = vmatprep.mubr.msk.f32.mxu1 %vm996_vm1, %v857_v63 }
 0x318   : > { %v861_v2 = vpop.permute.xlu0 %860 }
 0x319   : > { %2671 = vmatprep.mubr.msk.f32.mxu0 %vm996_vm1, %v861_v2 }
 0x31c   : > { %v865_v7 = vpop.permute.xlu0 %864 }
 0x346   : > { %v916_v6 = vpop.trf.xlu1 }
 0x347   : > { %2664 = vmatprep.subr.mxu1 %v916_v6 }
 0x348   : > { %2665 = vmatpush3.msra.mxu1 %v916_v6 }
 0x349   : > { %2667 = vmatmul.mubr.msk.f32.vlgmr.msra.gmra.mrb[0].mxu1 %vm996_vm1, %v859_v3 }
 0x34a   : > { %2676 = vmatprep.mubr.msk.f32.mxu1 %vm996_vm1, %v865_v7 }
 0x34d   : > { %v948_v8 = vpop.trf.xlu0 }
 0x34e   : > { %2669 = vmatprep.subr.mxu0 %v948_v8 }
 0x34f   : > { %2670 = vmatpush3.msra.mxu0 %v948_v8 }
 0x350   : > { %2672 = vmatmul.mubr.msk.f32.vlgmr.msra.gmra.mrb[8].mxu0 %vm996_vm1, %v863_v4  ;;  %2798 = vmatprep.subr.bf16.mxu0 %v2797_v52  ;;  %v1726_v4 = vld [vmem:[%s3582_s6] sm:$0xff] }
 0x351   : > { %2800 = vmatpush3.bf16.msra.mxu0 %v2797_v52 }
 0x355   : > { %v980_v9 = vpop.trf.xlu0 }
 0x356   : > { %2674 = vmatprep.subr.mxu1 %v980_v9 }
 0x357   : > { %2675 = vmatpush3.msra.mxu1 %v980_v9 }
 0x358   : > { %2677 = vmatmul.mubr.msk.f32.vlgmr.msra.gmra.mrb[2].mxu1 %vm996_vm1, %v867_v5 }
 0x3cb   : > { %v2663_v10 = vpop.f32.mrb[6].mxu0 }
 0x3cc   : > { %v1067_v11 = vpop.f32.mrb[7].mxu0  ;;  %v1317_v12 = vsel %vm1313_vm2, %v2663_v10, -inf }
 0x3cd   : > { %1318 = vmax.xlane.f32.xlu0 %v1317_v12  ;;  %v1314_v13 = vsel %vm1313_vm2, %v1067_v11, -inf }
 0x3ce   : > { %1315 = vmax.xlane.f32.xlu1 %v1314_v13 }
 0x41c   : > { %v2668_v14 = vpop.f32.mrb[0].mxu1 }
 0x41d   : > { %v1146_v15 = vpop.f32.mrb[1].mxu1  ;;  %v1323_v16 = vsel %vm1313_vm2, %v2668_v14, -inf }
 0x41e   : > { %1324 = vmax.xlane.f32.xlu1 %v1323_v16  ;;  %v1320_v21 = vsel %vm1313_vm2, %v1146_v15, -inf }
 0x423   : > { %v2673_v17 = vpop.f32.mrb[8].mxu0 }
 0x424   : > { %v1225_v18 = vpop.f32.mrb[9].mxu0  ;;  %v1329_v19 = vsel %vm1313_vm2, %v2673_v17, -inf }
 0x425   : > { %1330 = vmax.xlane.f32.xlu1 %v1329_v19  ;;  %v1326_v20 = vsel %vm1313_vm2, %v1225_v18, -inf  ;;  %v1729_v19 = vld [vmem:[%s3582_s6 + $0x18] sm:$0xff] }
 0x426   : > { %1327 = vmax.xlane.f32.xlu0 %v1326_v20 }
 0x429   : > { %1321 = vmax.xlane.f32.xlu1 %v1320_v21 }
 0x42b   : > { %v2678_v22 = vpop.f32.mrb[2].mxu1 }
 0x42c   : > { %v1304_v23 = vpop.f32.mrb[3].mxu1  ;;  %v1335_v24 = vsel %vm1313_vm2, %v2678_v22, -inf }
 0x42d   : > { %1336 = vmax.xlane.f32.xlu1 %v1335_v24  ;;  %v1332_v25 = vsel %vm1313_vm2, %v1304_v23, -inf }
 0x42e   : > { %1333 = vmax.xlane.f32.xlu0 %v1332_v25 }
 0x43e   : > { %2933 = vrot.lane.b32.xlu1 %v3354_v53, %s3106_s27 }
 0x442   : > { %2938 = vrot.lane.b32.xlu1 %v3354_v53, %s3107_s24  ;;  %s3523_s24 = scalar_lea.hbm %s3591_s15, %s2543_s17 }
 0x444   : > { %2928 = vrot.lane.b32.xlu0 %v3354_v53, %s3105_s22 }
 0x45a   : > { %v1319_v26 = vpop.xlane.xlu0 %1318 }
 0x45b   : > { %v1339_v27 = vsub.f32 %v2663_v10, %v1319_v26  ;;  %v1316_v28 = vpop.xlane.xlu1 %1315 }
 0x45c   : > { %v1338_v29 = vsub.f32 %v1067_v11, %v1316_v28 }
 0x45d   : > { %v1348_v30 = vmul.f32 1.442695, %v1339_v27 }
 0x45e   : > { %v1346_v31 = vmul.f32 1.442695, %v1338_v29 }
 0x45f   : > { %2946 = vpow2.f32 %v1348_v30 }
 0x460   : > { %2948 = vpow2.f32 %v1346_v31 }
 0x469   : > { %v2947_v32 = vpop.eup %2946 }
 0x46a   : > { %v2949_v33 = vpop.eup %2948  ;;  %v1365_v34 = vsel %vm1313_vm2, %v2947_v32, 0.0 }
 0x46b   : > { %2683 = vmatprep.mubr.msk.f32.mxu0 %vm1313_vm2, %v2949_v33  ;;  %1366 = vadd.xlane.f32.xlu0 %v1365_v34  ;;  %v1362_v35 = vsel %vm1313_vm2, %v2949_v33, 0.0 }
 0x46c   : > { %2684 = vmatmul.mubr.msk.f32.vlgmr.msra.gmra.mrb[10].mxu0 %vm1313_vm2, %v2947_v32  ;;  %1363 = vadd.xlane.f32.xlu1 %v1362_v35 }
 0x4ab   : > { %v1325_v36 = vpop.xlane.xlu1 %1324 }
 0x4ac   : > { %v1341_v37 = vsub.f32 %v2668_v14, %v1325_v36 }
 0x4ae   : > { %v1352_v38 = vmul.f32 1.442695, %v1341_v37 }
 0x4b0   : > { %2950 = vpow2.f32 %v1352_v38 }
 0x4b2   : > { %v1331_v39 = vpop.xlane.xlu1 %1330 }
 0x4b3   : > { %v1328_v40 = vpop.xlane.xlu0 %1327  ;;  %v1343_v41 = vsub.f32 %v2673_v17, %v1331_v39  ;;  %v1728_v17 = vld [vmem:[%s3582_s6 + $0x10] sm:$0xff] }
 0x4b4   : > { %v1342_v42 = vsub.f32 %v1225_v18, %v1328_v40  ;;  %v1727_v18 = vld [vmem:[%s3582_s6 + $0x8] sm:$0xff] }
 0x4b5   : > { %v1356_v46 = vmul.f32 1.442695, %v1343_v41 }
 0x4b6   : > { %v1354_v43 = vmul.f32 1.442695, %v1342_v42  ;;  %v1322_v44 = vpop.xlane.xlu1 %1321 }
 0x4b7   : > { %v1340_v45 = vsub.f32 %v1146_v15, %v1322_v44 }
 0x4b8   : > { %2952 = vpow2.f32 %v1354_v43 }
 0x4b9   : > { %v1350_v47 = vmul.f32 1.442695, %v1340_v45 }
 0x4ba   : > { %v2951_v48 = vpop.eup %2950  ;;  %v1337_v49 = vpop.xlane.xlu1 %1336 }
 0x4bb   : > { %2954 = vpow2.f32 %v1350_v47  ;;  %v1345_v50 = vsub.f32 %v2678_v22, %v1337_v49  ;;  %v1334_v51 = vpop.xlane.xlu0 %1333  ;;  %v1371_v52 = vsel %vm1313_vm2, %v2951_v48, 0.0 }
 0x4bc   : > { %2956 = vpow2.f32 %v1356_v46  ;;  %v1344_v53 = vsub.f32 %v1304_v23, %v1334_v51  ;;  %1372 = vadd.xlane.f32.xlu0 %v1371_v52 }
 0x4bd   : > { %v1360_v54 = vmul.f32 1.442695, %v1345_v50 }
 0x4be   : > { %v1358_v55 = vmul.f32 1.442695, %v1344_v53  ;;  %v2934_v56 = vpop.permute.xlu1 %2933 }
 0x4bf   : > { %v2936_v57 = vunpack.i.h.bf16 %v2934_v56  ;;  %v2935_v58 = vunpack.i.l.bf16 %v2934_v56  ;;  %v2929_v59 = vpop.permute.xlu0 %2928 }
 0x4c0   : > { %2958 = vpow2.f32 %v1358_v55  ;;  %v2931_v60 = vunpack.i.h.bf16 %v2929_v59  ;;  %v2930_v61 = vunpack.i.l.bf16 %v2929_v59 }
 0x4c1   : > { %2960 = vpow2.f32 %v1360_v54  ;;  %v2805_v62 = vpack.c.bf16 %v2936_v57, %v2935_v58 }
 0x4c2   : > { %v2953_v63 = vpop.eup %2952  ;;  %v2801_v2 = vpack.c.bf16 %v2931_v60, %v2930_v61  ;;  %v2939_v3 = vpop.permute.xlu1 %2938 }
 0x4c3   : > { %v2941_v5 = vunpack.i.h.bf16 %v2939_v3  ;;  %v2940_v6 = vunpack.i.l.bf16 %v2939_v3  ;;  %2806 = vmatprep.subr.bf16.mxu0 %v2805_v62  ;;  %2697 = vmatprep.mubr.msk.f32.mxu0 %vm1313_vm2, %v2953_v63  ;;  %v1374_v7 = vsel %vm1313_vm2, %v2953_v63, 0.0 }
 0x4c4   : > { %2808 = vmatpush3.bf16.msra.mxu0 %v2805_v62  ;;  %1375 = vadd.xlane.f32.xlu1 %v1374_v7  ;;  %v2525_v7 = vld [vmem:[%s3583_s7] ss:$0 sm:$0xff] }
 0x4c5   : > { %v2955_v8 = vpop.eup %2954  ;;  %v2809_v9 = vpack.c.bf16 %v2941_v5, %v2940_v6  ;;  %2802 = vmatprep.subr.bf16.mxu1 %v2801_v2  ;;  %2707 = vmatprep.subr.mxu0 %v1726_v4 }
 0x4c6   : > { %v2957_v10 = vpop.eup %2956  ;;  %2804 = vmatpush3.bf16.msra.mxu1 %v2801_v2  ;;  %2690 = vmatprep.mubr.msk.f32.mxu1 %vm1313_vm2, %v2955_v8  ;;  %v1368_v11 = vsel %vm1313_vm2, %v2955_v8, 0.0 }
 0x4c7   : > { %1369 = vadd.xlane.f32.xlu0 %v1368_v11  ;;  %2698 = vmatmul.mubr.msk.f32.vlgmr.msra.gmra.mrb[12].mxu0 %vm1313_vm2, %v2957_v10  ;;  %v1377_v13 = vsel %vm1313_vm2, %v2957_v10, 0.0 }
 0x4c8   : > { %2810 = vmatprep.subr.bf16.mxu1 %v2809_v9  ;;  %2708 = vmatpush3.msra.mxu0 %v1726_v4 }
 0x4c9   : > { %2691 = vmatmul.mubr.msk.f32.vlgmr.msra.gmra.mrb[4].mxu1 %vm1313_vm2, %v2951_v48  ;;  %2717 = vmatprep.subr.mxu0 %v1728_v17 }
 0x4ca   : > { %v2959_v12 = vpop.eup %2958  ;;  %2812 = vmatpush3.bf16.msra.mxu1 %v2809_v9 }
 0x4cb   : > { %v2961_v14 = vpop.eup %2960  ;;  %1378 = vadd.xlane.f32.xlu0 %v1377_v13  ;;  %2704 = vmatprep.mubr.msk.f32.mxu1 %vm1313_vm2, %v2959_v12  ;;  %v1380_v15 = vsel %vm1313_vm2, %v2959_v12, 0.0 }
 0x4cc   : > { %1381 = vadd.xlane.f32.xlu1 %v1380_v15  ;;  %v1383_v16 = vsel %vm1313_vm2, %v2961_v14, 0.0  ;;  %2712 = vmatprep.subr.mxu1 %v1727_v18  ;;  %v3435_v15 = vld [vmem:[%s3584_s8] ss:$0 sm:$0xff] }
 0x4cd   : > { %2705 = vmatmul.mubr.msk.f32.vlgmr.msra.gmra.mrb[6].mxu1 %vm1313_vm2, %v2961_v14 }
 0x4ce   : > { %2713 = vmatpush3.msra.mxu1 %v1727_v18 }
 0x4cf   : > { %1384 = vadd.xlane.f32.xlu0 %v1383_v16  ;;  %2722 = vmatprep.subr.mxu1 %v1729_v19 }
 0x4f8   : > { %v1367_v21 = vpop.xlane.xlu0 %1366 }
 0x4f9   : > { %v1364_v20 = vpop.xlane.xlu1 %1363 }
 0x4fa   : > { %2962 = vrcp.f32 %v1364_v20 }
 0x4fb   : > { %2964 = vrcp.f32 %v1367_v21 }
 0x504   : > { %v2963_v23 = vpop.eup %2962 }
 0x505   : > { %v2965_v25 = vpop.eup %2964 }
 0x53f   : > { %v2685_v22 = vpop.f32.mrb[10].mxu0 }
 0x540   : > { %v1458_v24 = vpop.f32.mrb[11].mxu0  ;;  %v1719_v27 = vmul.f32 %v2965_v25, %v2685_v22 }
 0x541   : > { %v1718_v26 = vmul.f32 %v2963_v23, %v1458_v24 }
 0x543   : > { %2709 = vmatprep.mubr.msk.f32.mxu0 %vm996_vm1, %v1718_v26 }
 0x544   : > { %2710 = vmatmul.mubr.msk.f32.vlgmr.msra.gmra.mrb[14].mxu0 %vm996_vm1, %v1719_v27 }
 0x545   : > { %2718 = vmatpush3.msra.mxu0 %v1728_v17 }
 0x549   : > { %v1373_v28 = vpop.xlane.xlu0 %1372 }
 0x551   : > { %v1376_v30 = vpop.xlane.xlu1 %1375 }
 0x552   : > { %2966 = vrcp.f32 %v1376_v30  ;;  %v2132_v30 = vld [vmem:[#allocation2] sm:$0xff] }
 0x554   : > { %v1370_v29 = vpop.xlane.xlu0 %1369 }
 0x558   : > { %v1379_v31 = vpop.xlane.xlu0 %1378 }
 0x559   : > { %2968 = vrcp.f32 %v1379_v31  ;;  %v1382_v32 = vpop.xlane.xlu1 %1381  ;;  %v2133_v31 = vld [vmem:[#allocation2 + $0x8] sm:$0xff] }
 0x55a   : > { %2970 = vrcp.f32 %v1370_v29 }
 0x55b   : > { %2972 = vrcp.f32 %v1373_v28 }
 0x55c   : > { %v1385_v33 = vpop.xlane.xlu0 %1384  ;;  %2974 = vrcp.f32 %v1382_v32  ;;  %v2967_v35 = vpop.eup %2966  ;;  %v2813_v32 = vpack.c.bf16 %v2133_v31, %v2132_v30 }
 0x55d   : > { %2976 = vrcp.f32 %v1385_v33  ;;  %v2134_v33 = vld [vmem:[#allocation2 + $0x10] sm:$0xff] }
 0x55e   : > { %2814 = vmatprep.subr.bf16.mxu0 %v2813_v32 }
 0x563   : > { %v2969_v37 = vpop.eup %2968 }
 0x564   : > { %v2971_v40 = vpop.eup %2970 }
 0x565   : > { %v2973_v43 = vpop.eup %2972 }
 0x566   : > { %v2975_v47 = vpop.eup %2974 }
 0x567   : > { %v2977_v49 = vpop.eup %2976 }
 0x59a   : > { %v2699_v34 = vpop.f32.mrb[12].mxu0 }
 0x59b   : > { %v1620_v36 = vpop.f32.mrb[13].mxu0  ;;  %v1723_v41 = vmul.f32 %v2969_v37, %v2699_v34  ;;  %v2135_v34 = vld [vmem:[#allocation2 + $0x18] sm:$0xff] }
 0x59c   : > { %v2692_v38 = vpop.f32.mrb[4].mxu1  ;;  %v1722_v39 = vmul.f32 %v2967_v35, %v1620_v36  ;;  %v2817_v35 = vpack.c.bf16 %v2135_v34, %v2134_v33 }
 0x59d   : > { %v1539_v42 = vpop.f32.mrb[5].mxu1  ;;  %v1721_v45 = vmul.f32 %v2973_v43, %v2692_v38  ;;  %v2527_v43 = vld [vmem:[%s3585_s9] ss:$0 sm:$0xff] }
 0x59e   : > { %v1720_v44 = vmul.f32 %v2971_v40, %v1539_v42  ;;  %2719 = vmatprep.mubr.msk.f32.mxu0 %vm996_vm1, %v1722_v39 }
 0x59f   : > { %2720 = vmatmul.mubr.msk.f32.vlgmr.msra.gmra.mrb[16].mxu0 %vm996_vm1, %v1723_v41 }
 0x5a0   : > { %v2706_v46 = vpop.f32.mrb[6].mxu1  ;;  %2714 = vmatprep.mubr.msk.f32.mxu1 %vm996_vm1, %v1720_v44  ;;  %2816 = vmatpush3.bf16.msra.mxu0 %v2813_v32 }
 0x5a1   : > { %v1701_v48 = vpop.f32.mrb[7].mxu1  ;;  %2715 = vmatmul.mubr.msk.f32.vlgmr.msra.gmra.mrb[8].mxu1 %vm996_vm1, %v1721_v45  ;;  %v1725_v51 = vmul.f32 %v2977_v49, %v2706_v46  ;;  %2818 = vmatprep.subr.bf16.mxu0 %v2817_v35 }
 0x5a2   : > { %v1724_v50 = vmul.f32 %v2975_v47, %v1701_v48  ;;  %2723 = vmatpush3.msra.mxu1 %v1729_v19  ;;  %v2528_v48 = vld [vmem:[%s3586_s10] ss:$0 sm:$0xff] }
 0x5a4   : > { %2724 = vmatprep.mubr.msk.f32.mxu1 %vm996_vm1, %v1724_v50  ;;  %2820 = vmatpush3.bf16.msra.mxu0 %v2817_v35 }
 0x5a5   : > { %2725 = vmatmul.mubr.msk.f32.vlgmr.msra.gmra.mrb[10].mxu1 %vm996_vm1, %v1725_v51 }
 0x617   : > { %v2711_v52 = vpop.f32.mrb[14].mxu0 }
 0x618   : > { %v1802_v53 = vpop.f32.mrb[15].mxu0  ;;  %v2061_v57 = vsel %vm525_vm0, %v2711_v52, 0.0  ;;  %v2278_v52 = vld [vmem:[%s3589_s13] sm:$0xff] }
 0x619   : > { %v2054_v60 = vsel %vm525_vm0, %v1802_v53, 0.0  ;;  %v2279_v53 = vld [vmem:[%s3589_s13 + $0x8] sm:$0xff] }
 0x672   : > { %v2721_v54 = vpop.f32.mrb[16].mxu0 }
 0x673   : > { %v1964_v55 = vpop.f32.mrb[17].mxu0  ;;  %v2064_v63 = vsel %vm525_vm0, %v2721_v54, 0.0  ;;  %v2821_v54 = vpack.c.bf16 %v2279_v53, %v2278_v52 }
 0x674   : > { %v2716_v56 = vpop.f32.mrb[8].mxu1  ;;  %v2057_v3 = vsel %vm525_vm0, %v1964_v55, 0.0  ;;  %v2280_v55 = vld [vmem:[%s3589_s13 + $0x10] sm:$0xff] }
 0x675   : > { %v2062_v58 = vsel %vm525_vm0, %v2716_v56, 0.0  ;;  %v1883_v59 = vpop.f32.mrb[9].mxu1  ;;  %2822 = vmatprep.subr.bf16.mxu1 %v2821_v54  ;;  %v2281_v56 = vld [vmem:[%s3589_s13 + $0x18] sm:$0xff] }
 0x676   : > { %v2063_v61 = vadd.f32 %v2062_v58, %v2061_v57  ;;  %v2055_v62 = vsel %vm525_vm0, %v1883_v59, 0.0  ;;  %2824 = vmatpush3.bf16.msra.mxu1 %v2821_v54  ;;  %v2825_v57 = vpack.c.bf16 %v2281_v56, %v2280_v55  ;;  %v2282_v58 = vld [vmem:[%s3589_s13 + $0x20] sm:$0xff]  ;;  %v2283_v59 = vld [vmem:[%s3589_s13 + $0x28] sm:$0xff] }
 0x677   : > { %v2056_v2 = vadd.f32 %v2055_v62, %v2054_v60  ;;  %v2829_v60 = vpack.c.bf16 %v2283_v59, %v2282_v58  ;;  %v2285_v62 = vld [vmem:[%s3589_s13 + $0x38] sm:$0xff] }
 0x678   : > { %v2726_v4 = vpop.f32.mrb[10].mxu1  ;;  %v2065_v5 = vadd.f32 %v2064_v63, %v2063_v61  ;;  %2826 = vmatprep.subr.bf16.mxu1 %v2825_v57  ;;  %v2284_v61 = vld [vmem:[%s3589_s13 + $0x30] sm:$0xff] }
 0x679   : > { %v2066_v6 = vsel %vm525_vm0, %v2726_v4, 0.0  ;;  %v2045_v8 = vpop.f32.mrb[11].mxu1  ;;  %v2058_v9 = vadd.f32 %v2057_v3, %v2056_v2  ;;  %v2833_v63 = vpack.c.bf16 %v2285_v62, %v2284_v61  ;;  %v2286_v2 = vld [vmem:[%s3589_s13 + $0x40] sm:$0xff]  ;;  %v2287_v3 = vld [vmem:[%s3589_s13 + $0x48] sm:$0xff] }
 0x67a   : > { %v2067_v10 = vadd.f32 %v2066_v6, %v2065_v5  ;;  %v2059_v11 = vsel %vm525_vm0, %v2045_v8, 0.0  ;;  %2828 = vmatpush3.bf16.msra.mxu1 %v2825_v57  ;;  %v2837_v4 = vpack.c.bf16 %v2287_v3, %v2286_v2  ;;  %v2288_v5 = vld [vmem:[%s3589_s13 + $0x50] sm:$0xff]  ;;  %v2289_v6 = vld [vmem:[%s3589_s13 + $0x58] sm:$0xff]  ;;  %v2290_v8 = vld [vmem:[%s3589_s13 + $0x60] sm:$0xff] }
 0x67b   : > { %v2060_v12 = vadd.f32 %v2059_v11, %v2058_v9  ;;  %2830 = vmatprep.subr.bf16.mxu1 %v2829_v60  ;;  %v2291_v9 = vld [vmem:[%s3589_s13 + $0x68] sm:$0xff]  ;;  %v2292_v11 = vld [vmem:[%s3589_s13 + $0x70] sm:$0xff] }
 0x67c   : > { %v2076_v13 = vadd.f32 %v2525_v7, %v2067_v10  ;;  %v2845_v10 = vpack.c.bf16 %v2291_v9, %v2290_v8  ;;  %v2536_v8 = vld [vmem:[%s3590_s14] ss:$0 sm:$0xff] }
 0x67d   : > { %v2075_v14 = vadd.f32 %v2525_v7, %v2060_v12  ;;  %v2841_v7 = vpack.c.bf16 %v2289_v6, %v2288_v5  ;;  %v2293_v12 = vld [vmem:[%s3589_s13 + $0x78] sm:$0xff] }
 0x67e   : > { %v2078_v16 = vadd.f32 %v2076_v13, %v3291_v1  ;;  %2832 = vmatpush3.bf16.msra.mxu1 %v2829_v60  ;;  %v2849_v13 = vpack.c.bf16 %v2293_v12, %v2292_v11 }
 0x67f   : > { %v2077_v17 = vadd.f32 %v2075_v14, %v3289_v0  ;;  %2834 = vmatprep.subr.bf16.mxu1 %v2833_v63  ;;  %v2529_v14 = vld [vmem:[%s3588_s12] ss:$0 sm:$0xff] }
 0x680   : > { %v3440_v18 = vmul.f32 %v3435_v15, %v2078_v16 }
 0x681   : > { %v3443_v19 = vmul.f32 %v3435_v15, %v2077_v17 }
 0x682   : > { %v2091_v20 = vsel %vm525_vm0, %v3440_v18, 0.0  ;;  %2836 = vmatpush3.bf16.msra.mxu1 %v2833_v63 }
 0x683   : > { %2092 = vadd.xlane.f32.xlu0 %v2091_v20  ;;  %v2088_v21 = vsel %vm525_vm0, %v3443_v19, 0.0  ;;  %2838 = vmatprep.subr.bf16.mxu1 %v2837_v4 }
 0x684   : > { %2089 = vadd.xlane.f32.xlu1 %v2088_v21 }
 0x686   : > { %2840 = vmatpush3.bf16.msra.mxu1 %v2837_v4 }
 0x687   : > { %2842 = vmatprep.subr.bf16.mxu1 %v2841_v7 }
 0x68a   : > { %2844 = vmatpush3.bf16.msra.mxu1 %v2841_v7 }
 0x68b   : > { %2846 = vmatprep.subr.bf16.mxu1 %v2845_v10 }
 0x68e   : > { %2848 = vmatpush3.bf16.msra.mxu1 %v2845_v10 }
 0x68f   : > { %2850 = vmatprep.subr.bf16.mxu1 %v2849_v13 }
 0x692   : > { %2852 = vmatpush3.bf16.msra.mxu1 %v2849_v13 }
 0x710   : > { %v2093_v22 = vpop.xlane.xlu0 %2092 }
 0x711   : > { %v2095_v23 = vmul.f32 0.03125, %v2093_v22  ;;  %v2090_v24 = vpop.xlane.xlu1 %2089 }
 0x712   : > { %v2094_v1 = vmul.f32 0.03125, %v2090_v24 }
 0x713   : > { %v2097_v0 = vsub.f32 %v3440_v18, %v2095_v23 }
 0x714   : > { %v2096_v25 = vsub.f32 %v3443_v19, %v2094_v1 }
 0x715   : > { %v2099_v26 = vmul.f32 %v2097_v0, %v2097_v0 }
 0x716   : > { %v2098_v27 = vmul.f32 %v2096_v25, %v2096_v25 }
 0x717   : > { %v2103_v28 = vsel %vm525_vm0, %v2099_v26, 0.0 }
 0x718   : > { %2104 = vadd.xlane.f32.xlu0 %v2103_v28  ;;  %v2100_v29 = vsel %vm525_vm0, %v2098_v27, 0.0 }
 0x719   : > { %2101 = vadd.xlane.f32.xlu1 %v2100_v29 }
 0x7a5   : > { %v2105_v36 = vpop.xlane.xlu0 %2104 }
 0x7a6   : > { %v2107_v37 = vmul.f32 0.03125, %v2105_v36  ;;  %v2102_v38 = vpop.xlane.xlu1 %2101 }
 0x7a7   : > { %v2106_v39 = vmul.f32 0.03125, %v2102_v38 }
 0x7a8   : > { %v2109_v40 = vadd.f32 1e-05, %v2107_v37 }
 0x7a9   : > { %v2108_v41 = vadd.f32 1e-05, %v2106_v39 }
 0x7aa   : > { %2978 = vrsqrt.f32 %v2109_v40 }
 0x7ab   : > { %2980 = vrsqrt.f32 %v2108_v41 }
 0x7b4   : > { %v2979_v42 = vpop.eup %2978 }
 0x7b5   : > { %v2981_v44 = vpop.eup %2980  ;;  %v2113_v45 = vmul.f32 %v2979_v42, %v2097_v0 }
 0x7b6   : > { %v2112_v46 = vmul.f32 %v2981_v44, %v2096_v25 }
 0x7b7   : > { %v2122_v47 = vmul.f32 %v2527_v43, %v2113_v45 }
 0x7b8   : > { %v2121_v49 = vmul.f32 %v2527_v43, %v2112_v46 }
 0x7b9   : > { %v2131_v51 = vadd.f32 %v2528_v48, %v2122_v47 }
 0x7ba   : > { %v2130_v50 = vadd.f32 %v2528_v48, %v2121_v49 }
 0x7bc   : > { %2735 = vmatprep.mubr.msk.f32.mxu0 %vm525_vm0, %v2130_v50 }
 0x7bd   : > { %2736 = vmatmul.mubr.msk.f32.vlgmr.msra.gmra.mrb[18].mxu0 %vm525_vm0, %v2131_v51 }
 0x890   : > { %v2737_v16 = vpop.f32.mrb[18].mxu0 }
 0x891   : > { %v2221_v17 = vadd.f32 %v2737_v16, %v2529_v14  ;;  %v2215_v20 = vpop.f32.mrb[19].mxu0 }
 0x892   : > { %v2216_v21 = vadd.f32 %v2529_v14, %v2215_v20 }
 0x893   : > { %v2227_v22 = vmul.f32 0.70710677, %v2221_v17  ;;  %v2225_v5 = vmul.f32 0.5, %v2221_v17 }
 0x894   : > { %v2226_v23 = vmul.f32 0.70710677, %v2216_v21  ;;  %v2224_v3 = vmul.f32 0.5, %v2216_v21 }
 0x895   : > { %v2229_v24 = vand.u32 2147483647, %v2227_v22  ;;  %vm2269_vm3 = vcmp.ge.f32.partialorder %v2227_v22, 0.0 }
 0x896   : > { %v2228_v1 = vand.u32 2147483647, %v2226_v23  ;;  %vm2268_vm4 = vcmp.ge.f32.partialorder %v2226_v23, 0.0 }
 0x897   : > { %v2231_v0 = vmul.f32 0.3275911, %v2229_v24  ;;  %v2257_v28 = vsub.f32 0.0, %v2229_v24 }
 0x898   : > { %v2230_v25 = vmul.f32 0.3275911, %v2228_v1  ;;  %v2256_v29 = vsub.f32 0.0, %v2228_v1 }
 0x899   : > { %v2233_v26 = vadd.f32 1.0, %v2231_v0  ;;  %v2259_v31 = vmul.f32 %v2257_v28, %v2229_v24 }
 0x89a   : > { %v2232_v27 = vadd.f32 1.0, %v2230_v25  ;;  %v2258_v34 = vmul.f32 %v2256_v29, %v2228_v1 }
 0x89b   : > { %2982 = vrcp.f32 %v2233_v26  ;;  %v2262_v37 = vmul.f32 1.442695, %v2259_v31 }
 0x89c   : > { %2984 = vrcp.f32 %v2232_v27  ;;  %v2260_v40 = vmul.f32 1.442695, %v2258_v34 }
 0x89d   : > { %2986 = vpow2.f32 %v2262_v37 }
 0x89e   : > { %2988 = vpow2.f32 %v2260_v40 }
 0x8a5   : > { %v2983_v30 = vpop.eup %2982 }
 0x8a6   : > { %v2985_v32 = vpop.eup %2984  ;;  %v2239_v33 = vmul.f32 1.0614054, %v2983_v30 }
 0x8a7   : > { %v2238_v35 = vmul.f32 1.0614054, %v2985_v32  ;;  %v2987_v53 = vpop.eup %2986 }
 0x8a8   : > { %v2533_v36 = vadd.f32 -1.4531521, %v2239_v33  ;;  %v2989_v55 = vpop.eup %2988 }
 0x8a9   : > { %v2532_v38 = vadd.f32 -1.4531521, %v2238_v35 }
 0x8aa   : > { %v2243_v39 = vmul.f32 %v2983_v30, %v2533_v36 }
 0x8ab   : > { %v2242_v41 = vmul.f32 %v2985_v32, %v2532_v38 }
 0x8ac   : > { %v2245_v42 = vadd.f32 1.4214138, %v2243_v39 }
 0x8ad   : > { %v2244_v43 = vadd.f32 1.4214138, %v2242_v41 }
 0x8ae   : > { %v2247_v44 = vmul.f32 %v2983_v30, %v2245_v42 }
 0x8af   : > { %v2246_v45 = vmul.f32 %v2985_v32, %v2244_v43 }
 0x8b0   : > { %v2535_v46 = vadd.f32 -0.28449672, %v2247_v44 }
 0x8b1   : > { %v2534_v47 = vadd.f32 -0.28449672, %v2246_v45 }
 0x8b2   : > { %v2251_v48 = vmul.f32 %v2983_v30, %v2535_v46 }
 0x8b3   : > { %v2250_v49 = vmul.f32 %v2985_v32, %v2534_v47 }
 0x8b4   : > { %v2253_v50 = vadd.f32 0.2548296, %v2251_v48 }
 0x8b5   : > { %v2252_v51 = vadd.f32 0.2548296, %v2250_v49 }
 0x8b6   : > { %v2255_v52 = vmul.f32 %v2983_v30, %v2253_v50 }
 0x8b7   : > { %v2254_v54 = vmul.f32 %v2985_v32, %v2252_v51 }
 0x8b8   : > { %v2265_v56 = vmul.f32 %v2987_v53, %v2255_v52 }
 0x8b9   : > { %v2264_v57 = vmul.f32 %v2989_v55, %v2254_v54 }
 0x8ba   : > { %v2267_v58 = vsub.f32 1.0, %v2265_v56 }
 0x8bb   : > { %v2266_v59 = vsub.f32 1.0, %v2264_v57 }
 0x8bc   : > { %v2271_v60 = vsub.f32 0.0, %v2267_v58 }
 0x8bd   : > { %v2270_v61 = vsub.f32 0.0, %v2266_v59 }
 0x8be   : > { %v2273_v62 = vsel %vm2269_vm3, %v2267_v58, %v2271_v60 }
 0x8bf   : > { %v2275_v63 = vadd.f32 1.0, %v2273_v62  ;;  %v2272_v2 = vsel %vm2268_vm4, %v2266_v59, %v2270_v61 }
 0x8c0   : > { %v2274_v4 = vadd.f32 1.0, %v2272_v2 }
 0x8c1   : > { %v2277_v7 = vmul.f32 %v2275_v63, %v2225_v5 }
 0x8c2   : > { %v2276_v6 = vmul.f32 %v2274_v4, %v2224_v3 }
 0x8c4   : > { %2770 = vmatprep.mubr.f32.mxu1 %v2276_v6 }
 0x8c5   : > { %2771 = vmatmul.mubr.f32.vlgmr.msra.gmra.mrb[12].mxu1 %v2277_v7 }
 0x998   : > { %v2772_v9 = vpop.f32.mrb[12].mxu1 }
 0x999   : > { %v2373_v10 = vadd.f32 %v2772_v9, %v2536_v8  ;;  %v2367_v11 = vpop.f32.mrb[13].mxu1 }
 0x99a   : > { %v2368_v12 = vadd.f32 %v2536_v8, %v2367_v11 }
 0x99b   : > { %v2377_v13 = vadd.f32 %v2373_v10, %v3440_v18 }
 0x99c   : > { %v2376_v14 = vadd.f32 %v2368_v12, %v3443_v19 }
 0x99d   : > { %v2379_v16 = vmul.f32 %v3435_v15, %v2377_v13 }
 0x99e   : > { %v2378_v17 = vmul.f32 %v3435_v15, %v2376_v14 }
 0x99f   : > { %2381 = vst.msk [vmem:[%s516_s29 + $0x8] sm:$0xff] %vm525_vm0, %v2379_v16 }
 0x9a0   : > { %2380 = vst.msk [vmem:[%s516_s29] sm:$0xff] %vm525_vm0, %v2378_v17 }
 0x9a1   : > { %3031 = shalt.err (!%p3028_p6)
}
 0x9a2   : > { %s3032_s16 = scalar_lea.hbm %s3523_s24, 256  ;;  %s3036_s29 = scalar_lea.hbm %s3591_s15, 512 }
 0x9a3   : > { %p3033_p7 = scmp.ne.s32.totalorder %s3523_s24, %s3032_s16  ;;  %p3037_p0 = scmp.lt.u32.totalorder %s3523_s24, %s3591_s15 }
 0x9a4   : > { %p3038_p2 = scmp.lt.u32.totalorder %s3036_s29, %s3032_s16  ;;  %p3040_p8 = scmp.lt.u32.totalorder %s3032_s16, %s3523_s24 }
 0x9a5   : > { %p3034_p9 = pnand %p3033_p7, %p3617_p10 }
 0x9a6   : > { %p3039_p4 = por %p3038_p2, %p3037_p0 }
 0x9a7   : > { %p3035_p12 = pneg %p3034_p9 }
 0x9a8   : > { %p3041_p11 = por %p3040_p8, %p3039_p4 }
 0x9aa   : > { %p3042_p13 = pnand %p3041_p11, %p3035_p12 }
 0x9ac   : > { %3045 = shalt.err (!%p3042_p13)
}
 0x9ad   : > { %s3109_s23 = smov 128   ;;  %s3110_s30 = smov 8  }
 0x9ae   : > { %2857 = dma.vmem_to_hbm [thread:$0]  (%p3617_p10), %s3525_s20, 256, %s3523_s24, %s3530_s21, %s3109_s23, %s3109_s23, %s3110_s30  }
 0x9af PF: > { %s3618_s26 = sld [smem:[#allocation11_spill]]  ;;  %s3619_s25 = sld [smem:[#allocation8_spill]] }
 0x9b0   : > { %s3620_s18 = sld [smem:[#allocation13_spill]] }
 0x9b5   : > { %p2869_p1 = scmp.ge.s32.totalorder %s3618_s26, 2  ;;  %s2413_s17 = sand.u32 1, %s3619_s25  }
 0x9b6   : > { %p3621_p3 = scmp.ne.s32.totalorder %s3620_s18, 0  ;;  %s2414_s16 = scalar_lea.sflag [#allocation4], %s2413_s17 }
 0x9b8   : > { %p2864_p5 = pnand %p2869_p1, %p3621_p3 }
 0x9ba   : > { %3075 = dma.done.wait (!%p2864_p5), %s2414_s16, 256  }
 0x9bb   : > { %3077 = vsyncadd (!%p2864_p5), %s2414_s16, 4294967040  ;;  %s29_s23 = sadd.s32 1, %s3618_s26   ;;  %s3622_s29 = sld [smem:[#allocation9_spill]] }
 0x9bc   : > { %p26_p6 = scmp.ge.s32.totalorder %s29_s23, 4   ;;  %s3623_s20 = sld [smem:[#allocation14_spill]] }
 0x9bd   : > { %s3624_s21 = sld [smem:[#allocation10_spill]]  ;;  %s3625_s22 = sld [smem:[#allocation12_spill]] }
 0x9be   : > { %s3626_s18 = smov %s3084_s19  ;;  %28 = sbr.rel (!%p26_p6) target bundleno = 5 (0x5), region = 120 }
 0x9c1   : > { %s3627_s19 = smov %s3622_s29 }
 0x9c5   :  { %2419 = vsyncpa [#allocation3], 1 }
 0x9c6   :  { %2421 = vsyncpa [#allocation3 + $0x1], 1 }
 0x9c7   :  { %2422 = vsyncpa [#allocation4], 1 }
 0x9c8   :  { %2424 = vsyncpa [#allocation4 + $0x1], 1 }

</bundles_post_ra>
